<compile_context>
chip_gen: v6e
topology: v6e:2x2x1
jax: 0.10.0
libtpu: 0.0.40
codegen_flags: <defaults>
</compile_context>

<pallas_src>
import jax
import jax.numpy as jnp
from jax import lax
from jax.experimental import pallas as pl
from jax.experimental.pallas import tpu as pltpu

# ---------------- model hyper-parameters (small, synthetic) ----------------
VOCAB      = 64
VOCAB_PAD  = 128              # lane-dense LM-head / output padding
N_EMBD     = 32
N_HEAD     = 4
HEAD       = N_EMBD // N_HEAD
BLOCK_SIZE = 16
N_LAYER    = 2
IGNORE_IDX = -100
EPS        = 1e-5             # PyTorch nn.LayerNorm default
NEG_BIG    = -1e30            # additive causal-mask value (finite, no NaN risk)
MXU_DTYPE  = jnp.bfloat16     # MXU operand dtype for projections; accumulation f32


def _layer_norm(x, g, b):
    mu  = jnp.mean(x, axis=-1, keepdims=True)
    var = jnp.mean(jnp.square(x - mu), axis=-1, keepdims=True)
    return (x - mu) * lax.rsqrt(var + EPS) * g + b


# ------------------------------- kernel ------------------------------------
def gpt_kernel(x_ref, wqkv_ref, wo_ref, w1_ref, w2_ref, wf_ref,
               nrm_ref, wide_ref, out_ref):
    # x_ref: (T, C) for the current batch element (batch squeezed by BlockSpec)
    T = x_ref.shape[0]
    x = x_ref[...].astype(jnp.float32)

    nrm  = nrm_ref[...]          # (6L+2, C)  f32: ln1w,ln1b,ln2w,ln2b,bo,b2 / lnfw,lnfb
    wide = wide_ref[...]         # (L+1, 128) f32: b1 per layer, padded LM-head bias

    # additive causal bias: 0 where attendable, -1e30 where masked
    row  = lax.broadcasted_iota(jnp.int32, (T, T), 0)
    col  = lax.broadcasted_iota(jnp.int32, (T, T), 1)
    bias = jnp.where(row >= col, 0.0, NEG_BIG).astype(jnp.float32)
    scale = jnp.float32(HEAD ** -0.5)

    for l in range(N_LAYER):
        r = 6 * l
        # ---- causal multi-head self-attention (pre-LN) ----
        h  = _layer_norm(x, nrm[r + 0:r + 1, :], nrm[r + 1:r + 2, :])
        hb = h.astype(MXU_DTYPE)
        # three K=C matmuls; no lane-offset slicing of a fused output
        q = jnp.dot(hb, wqkv_ref[3 * l + 0], preferred_element_type=jnp.float32) * scale
        k = jnp.dot(hb, wqkv_ref[3 * l + 1], preferred_element_type=jnp.float32)
        v = jnp.dot(hb, wqkv_ref[3 * l + 2], preferred_element_type=jnp.float32)

        # (T, C) -> (H, T, D): heads become the single batch dim of the einsums
        qh = jnp.transpose(q.reshape(T, N_HEAD, HEAD), (1, 0, 2))
        kh = jnp.transpose(k.reshape(T, N_HEAD, HEAD), (1, 0, 2))
        vh = jnp.transpose(v.reshape(T, N_HEAD, HEAD), (1, 0, 2))

        wei = jnp.einsum('hqd,hkd->hqk', qh, kh,
                         preferred_element_type=jnp.float32)            # (H, T, T)
        wei = wei + bias[None, :, :]
        wei = wei - jnp.max(wei, axis=-1, keepdims=True)
        p = jnp.exp(wei)
        p = p * pl.reciprocal(jnp.sum(p, axis=-1, keepdims=True), approx=True)
        att = jnp.einsum('hqk,hkd->hqd', p, vh,
                         preferred_element_type=jnp.float32)            # (H, T, D)
        sa = jnp.transpose(att, (1, 0, 2)).reshape(T, N_EMBD)           # (T, C)

        sa = jnp.dot(sa.astype(MXU_DTYPE), wo_ref[l],
                     preferred_element_type=jnp.float32) + nrm[r + 4:r + 5, :]
        x = x + sa

        # ---- feed-forward ----
        h2 = _layer_norm(x, nrm[r + 2:r + 3, :], nrm[r + 3:r + 4, :])
        ff = jnp.dot(h2.astype(MXU_DTYPE), w1_ref[l],
                     preferred_element_type=jnp.float32) + wide[l:l + 1, :]
        ff = jnp.maximum(ff, 0.0)
        ff = jnp.dot(ff.astype(MXU_DTYPE), w2_ref[l],
                     preferred_element_type=jnp.float32) + nrm[r + 5:r + 6, :]
        x = x + ff

    # ---- final LayerNorm + LM head (lane-dense, padded to 128) ----
    xf = _layer_norm(x, nrm[6 * N_LAYER:6 * N_LAYER + 1, :],
                     nrm[6 * N_LAYER + 1:6 * N_LAYER + 2, :])
    logits = jnp.dot(xf.astype(MXU_DTYPE), wf_ref[...],
                     preferred_element_type=jnp.float32) + wide[N_LAYER:N_LAYER + 1, :]
    out_ref[...] = logits.astype(out_ref.dtype)                         # (T, 128) full vst


# ------------------------------ parameters ---------------------------------
def init_params(key):
    std = 0.02
    ks = jax.random.split(key, 10)
    f32 = jnp.float32
    return {
        "tok_emb": jax.random.normal(ks[0], (VOCAB, N_EMBD), f32) * std,
        "pos_emb": jax.random.normal(ks[1], (BLOCK_SIZE, N_EMBD), f32) * std,
        "ln1w": jnp.ones((N_LAYER, N_EMBD), f32),
        "ln1b": jnp.zeros((N_LAYER, N_EMBD), f32),
        "wq": jax.random.normal(ks[2], (N_LAYER, N_EMBD, N_EMBD), f32) * std,
        "wk": jax.random.normal(ks[3], (N_LAYER, N_EMBD, N_EMBD), f32) * std,
        "wv": jax.random.normal(ks[4], (N_LAYER, N_EMBD, N_EMBD), f32) * std,
        "wo": jax.random.normal(ks[5], (N_LAYER, N_EMBD, N_EMBD), f32) * std,
        "bo": jnp.zeros((N_LAYER, N_EMBD), f32),
        "ln2w": jnp.ones((N_LAYER, N_EMBD), f32),
        "ln2b": jnp.zeros((N_LAYER, N_EMBD), f32),
        "w1": jax.random.normal(ks[6], (N_LAYER, N_EMBD, 4 * N_EMBD), f32) * std,
        "b1": jnp.zeros((N_LAYER, 4 * N_EMBD), f32),
        "w2": jax.random.normal(ks[7], (N_LAYER, 4 * N_EMBD, N_EMBD), f32) * std,
        "b2": jnp.zeros((N_LAYER, N_EMBD), f32),
        "lnfw": jnp.ones((1, N_EMBD), f32),
        "lnfb": jnp.zeros((1, N_EMBD), f32),
        "wf": jax.random.normal(ks[8], (N_EMBD, VOCAB), f32) * std,
        "bf": jnp.zeros((1, VOCAB), f32),
    }


# ------------------------------- wrapper ------------------------------------
def gpt_forward(params, tokens, targets=None):
    B, T = tokens.shape

    # embedding lookups + positional add (plain-JAX glue)
    x = (params["tok_emb"][tokens] + params["pos_emb"][:T][None, :, :]).astype(jnp.float32)

    bf16 = lambda a: a.astype(MXU_DTYPE)   # MXU operands only; LN/bias stay f32

    # QKV weights stacked on a leading axis: rows 3l, 3l+1, 3l+2 = Wq, Wk, Wv
    wqkv = bf16(jnp.stack([params["wq"], params["wk"], params["wv"]],
                          axis=1).reshape(3 * N_LAYER, N_EMBD, N_EMBD))

    # lane-dense LM head: pad VOCAB=64 -> 128
    wf_pad = bf16(jnp.pad(params["wf"], ((0, 0), (0, VOCAB_PAD - VOCAB))))
    bf_pad = jnp.pad(params["bf"], ((0, 0), (0, VOCAB_PAD - VOCAB)))

    # packed width-C f32 params: per layer [ln1w, ln1b, ln2w, ln2b, bo, b2], then lnfw, lnfb
    per_layer = jnp.stack([params["ln1w"], params["ln1b"],
                           params["ln2w"], params["ln2b"],
                           params["bo"], params["b2"]], axis=1)          # (L, 6, C)
    nrm = jnp.concatenate([per_layer.reshape(6 * N_LAYER, N_EMBD),
                           params["lnfw"], params["lnfb"]], axis=0)      # (6L+2, C)

    # packed width-128 f32 biases: b1 per layer, then padded LM-head bias
    wide = jnp.concatenate([params["b1"], bf_pad], axis=0)               # (L+1, 128)

    const = lambda *shape: pl.BlockSpec(shape, lambda b: (0,) * len(shape))

    logits_pad = pl.pallas_call(
        gpt_kernel,
        grid=(B,),
        in_specs=[
            pl.BlockSpec((None, T, N_EMBD), lambda b: (b, 0, 0)),        # x (per batch)
            const(3 * N_LAYER, N_EMBD, N_EMBD),                          # wqkv
            const(N_LAYER, N_EMBD, N_EMBD),                              # wo
            const(N_LAYER, N_EMBD, 4 * N_EMBD),                          # w1
            const(N_LAYER, 4 * N_EMBD, N_EMBD),                          # w2
            const(N_EMBD, VOCAB_PAD),                                    # wf
            const(6 * N_LAYER + 2, N_EMBD),                              # nrm (packed)
            const(N_LAYER + 1, VOCAB_PAD),                               # wide (packed)
        ],
        out_specs=pl.BlockSpec((None, T, VOCAB_PAD), lambda b: (b, 0, 0)),
        out_shape=jax.ShapeDtypeStruct((B, T, VOCAB_PAD), jnp.float32),
        compiler_params=pltpu.CompilerParams(
            dimension_semantics=("parallel",)),                          # both v7x TCs
    )(x, wqkv, params["wo"].astype(MXU_DTYPE), bf16(params["w1"]),
      bf16(params["w2"]), wf_pad, nrm, wide)

    logits = logits_pad[:, :, :VOCAB]                                    # (B, T, VOCAB)

    if targets is None:
        return logits, None

    # cross-entropy with ignore_index (plain-JAX glue, matches F.cross_entropy mean)
    lg = logits.reshape(B * T, VOCAB)
    tg = targets.reshape(B * T)
    valid = tg != IGNORE_IDX
    logp = jax.nn.log_softmax(lg, axis=-1)
    nll = -jnp.take_along_axis(logp, jnp.clip(tg, 0, VOCAB - 1)[:, None], axis=-1)[:, 0]
    loss = jnp.sum(jnp.where(valid, nll, 0.0)) / jnp.maximum(jnp.sum(valid), 1)
    return lg, loss                                                      # mirrors PyTorch


# --------------------------------- main -------------------------------------
if __name__ == "__main__":
    key = jax.random.PRNGKey(0)
    pkey, tkey, gkey = jax.random.split(key, 3)

    params = init_params(pkey)

    B, T = 2, 8
    tokens  = jax.random.randint(tkey, (B, T), 0, VOCAB, dtype=jnp.int32)
    targets = jax.random.randint(gkey, (B, T), 0, VOCAB, dtype=jnp.int32)

    logits, loss = gpt_forward(params, tokens, targets)
    logits = jax.block_until_ready(logits)
    loss = jax.block_until_ready(loss)

    assert logits.shape == (B * T, VOCAB)
    assert bool(jnp.all(jnp.isfinite(logits))) and bool(jnp.isfinite(loss))
    print("KERNEL_OK")
</pallas_src>

<mosaic_0001>
module attributes {stable_mosaic.version = 11 : i64} {
  func.func @gpt_kernel(%arg0: i32, %arg1: memref<1x8x32xf32, #tpu.memory_space<vmem>>, %arg2: memref<6x32x32xbf16, #tpu.memory_space<vmem>>, %arg3: memref<2x32x32xbf16, #tpu.memory_space<vmem>>, %arg4: memref<2x32x128xbf16, #tpu.memory_space<vmem>>, %arg5: memref<2x128x32xbf16, #tpu.memory_space<vmem>>, %arg6: memref<32x128xbf16, #tpu.memory_space<vmem>>, %arg7: memref<14x32xf32, #tpu.memory_space<vmem>>, %arg8: memref<3x128xf32, #tpu.memory_space<vmem>>, %arg9: memref<1x8x128xf32, #tpu.memory_space<vmem>>) attributes {dimension_semantics = [#tpu.dimension_semantics<parallel>], iteration_bounds = array<i64: 2>, scalar_prefetch = 0 : i64, scratch_operands = 0 : i64, tpu.core_type = #tpu.core_type<tc>, window_params = [{transform_indices = @transform_0, window_bounds = array<i64: 1, 8, 32>}, {pipeline_mode = #tpu.pipeline_mode<synchronous>, transform_indices = @transform_1, window_bounds = array<i64: 6, 32, 32>}, {pipeline_mode = #tpu.pipeline_mode<synchronous>, transform_indices = @transform_2, window_bounds = array<i64: 2, 32, 32>}, {pipeline_mode = #tpu.pipeline_mode<synchronous>, transform_indices = @transform_3, window_bounds = array<i64: 2, 32, 128>}, {pipeline_mode = #tpu.pipeline_mode<synchronous>, transform_indices = @transform_4, window_bounds = array<i64: 2, 128, 32>}, {pipeline_mode = #tpu.pipeline_mode<synchronous>, transform_indices = @transform_5, window_bounds = array<i64: 32, 128>}, {pipeline_mode = #tpu.pipeline_mode<synchronous>, transform_indices = @transform_6, window_bounds = array<i64: 14, 32>}, {pipeline_mode = #tpu.pipeline_mode<synchronous>, transform_indices = @transform_7, window_bounds = array<i64: 3, 128>}, {transform_indices = @transform_8, window_bounds = array<i64: 1, 8, 128>}]} {
    %c0 = arith.constant 0 : index
    %c0_0 = arith.constant 0 : index
    %c0_1 = arith.constant 0 : index
    %0 = vector.load %arg1[%c0, %c0_0, %c0_1] : memref<1x8x32xf32, #tpu.memory_space<vmem>>, vector<1x8x32xf32>
    %1 = vector.shape_cast %0 : vector<1x8x32xf32> to vector<8x32xf32>
    %c0_2 = arith.constant 0 : index
    %c0_3 = arith.constant 0 : index
    %2 = vector.load %arg7[%c0_2, %c0_3] : memref<14x32xf32, #tpu.memory_space<vmem>>, vector<14x32xf32>
    %c0_4 = arith.constant 0 : index
    %c0_5 = arith.constant 0 : index
    %3 = vector.load %arg8[%c0_4, %c0_5] : memref<3x128xf32, #tpu.memory_space<vmem>>, vector<3x128xf32>
    %4 = tpu.iota {dimensions = array<i32: 0>} : vector<8x8xi32>
    %5 = tpu.iota {dimensions = array<i32: 1>} : vector<8x8xi32>
    %6 = arith.cmpi sge, %4, %5 : vector<8x8xi32>
    %cst = arith.constant 0.000000e+00 : f32
    %cst_6 = arith.constant -1.000000e+30 : f32
    %7 = vector.broadcast %cst : f32 to vector<8x8xf32>
    %8 = vector.broadcast %cst_6 : f32 to vector<8x8xf32>
    %9 = arith.select %6, %7, %8 : vector<8x8xi1>, vector<8x8xf32>
    %10 = vector.extract_strided_slice %2 {offsets = [0, 0], sizes = [1, 32], strides = [1, 1]} : vector<14x32xf32> to vector<1x32xf32>
    %11 = vector.extract_strided_slice %2 {offsets = [1, 0], sizes = [1, 32], strides = [1, 1]} : vector<14x32xf32> to vector<1x32xf32>
    %cst_7 = arith.constant dense<0.000000e+00> : vector<8xf32>
    %12 = vector.multi_reduction <add>, %1, %cst_7 [1] : vector<8x32xf32> to vector<8xf32>
    %13 = vector.shape_cast %12 : vector<8xf32> to vector<8x1xf32>
    %cst_8 = arith.constant 3.200000e+01 : f32
    %14 = vector.broadcast %cst_8 : f32 to vector<8x1xf32>
    %15 = arith.divf %13, %14 : vector<8x1xf32>
    %16 = vector.broadcast %15 : vector<8x1xf32> to vector<8x32xf32>
    %17 = arith.subf %1, %16 : vector<8x32xf32>
    %18 = arith.mulf %17, %17 : vector<8x32xf32>
    %cst_9 = arith.constant dense<0.000000e+00> : vector<8xf32>
    %19 = vector.multi_reduction <add>, %18, %cst_9 [1] : vector<8x32xf32> to vector<8xf32>
    %20 = vector.shape_cast %19 : vector<8xf32> to vector<8x1xf32>
    %cst_10 = arith.constant 3.200000e+01 : f32
    %21 = vector.broadcast %cst_10 : f32 to vector<8x1xf32>
    %22 = arith.divf %20, %21 : vector<8x1xf32>
    %23 = vector.broadcast %15 : vector<8x1xf32> to vector<8x32xf32>
    %24 = arith.subf %1, %23 : vector<8x32xf32>
    %cst_11 = arith.constant 9.99999974E-6 : f32
    %25 = vector.broadcast %cst_11 : f32 to vector<8x1xf32>
    %26 = arith.addf %22, %25 : vector<8x1xf32>
    %27 = math.rsqrt %26 : vector<8x1xf32>
    %28 = vector.broadcast %27 : vector<8x1xf32> to vector<8x32xf32>
    %29 = arith.mulf %24, %28 : vector<8x32xf32>
    %30 = vector.broadcast %10 : vector<1x32xf32> to vector<8x32xf32>
    %31 = arith.mulf %29, %30 : vector<8x32xf32>
    %32 = vector.broadcast %11 : vector<1x32xf32> to vector<8x32xf32>
    %33 = arith.addf %31, %32 : vector<8x32xf32>
    %34 = arith.truncf %33 : vector<8x32xf32> to vector<8x32xbf16>
    %c0_12 = arith.constant 0 : index
    %c0_13 = arith.constant 0 : index
    %c0_14 = arith.constant 0 : index
    %35 = vector.load %arg2[%c0_12, %c0_13, %c0_14] : memref<6x32x32xbf16, #tpu.memory_space<vmem>>, vector<1x32x32xbf16>
    %36 = vector.shape_cast %35 : vector<1x32x32xbf16> to vector<32x32xbf16>
    %cst_15 = arith.constant dense<0.000000e+00> : vector<8x32xf32>
    %37 = tpu.matmul %34, %36, %cst_15 {dimension_numbers = #tpu.dot_dimension_numbers<[1], [0], [0], [1], [0, 0, 1, 1], [], []>} : vector<8x32xbf16>, vector<32x32xbf16>, vector<8x32xf32> -> vector<8x32xf32>
    %cst_16 = arith.constant 0.353553385 : f32
    %38 = vector.broadcast %cst_16 : f32 to vector<8x32xf32>
    %39 = arith.mulf %37, %38 : vector<8x32xf32>
    %c1 = arith.constant 1 : index
    %c0_17 = arith.constant 0 : index
    %c0_18 = arith.constant 0 : index
    %40 = vector.load %arg2[%c1, %c0_17, %c0_18] : memref<6x32x32xbf16, #tpu.memory_space<vmem>>, vector<1x32x32xbf16>
    %41 = vector.shape_cast %40 : vector<1x32x32xbf16> to vector<32x32xbf16>
    %cst_19 = arith.constant dense<0.000000e+00> : vector<8x32xf32>
    %42 = tpu.matmul %34, %41, %cst_19 {dimension_numbers = #tpu.dot_dimension_numbers<[1], [0], [0], [1], [0, 0, 1, 1], [], []>} : vector<8x32xbf16>, vector<32x32xbf16>, vector<8x32xf32> -> vector<8x32xf32>
    %c2 = arith.constant 2 : index
    %c0_20 = arith.constant 0 : index
    %c0_21 = arith.constant 0 : index
    %43 = vector.load %arg2[%c2, %c0_20, %c0_21] : memref<6x32x32xbf16, #tpu.memory_space<vmem>>, vector<1x32x32xbf16>
    %44 = vector.shape_cast %43 : vector<1x32x32xbf16> to vector<32x32xbf16>
    %cst_22 = arith.constant dense<0.000000e+00> : vector<8x32xf32>
    %45 = tpu.matmul %34, %44, %cst_22 {dimension_numbers = #tpu.dot_dimension_numbers<[1], [0], [0], [1], [0, 0, 1, 1], [], []>} : vector<8x32xbf16>, vector<32x32xbf16>, vector<8x32xf32> -> vector<8x32xf32>
    %46 = vector.shape_cast %39 : vector<8x32xf32> to vector<8x4x8xf32>
    %47 = tpu.transpose %46, [1, 0, 2] : vector<8x4x8xf32> -> vector<4x8x8xf32>
    %48 = vector.shape_cast %42 : vector<8x32xf32> to vector<8x4x8xf32>
    %49 = tpu.transpose %48, [1, 0, 2] : vector<8x4x8xf32> -> vector<4x8x8xf32>
    %50 = vector.shape_cast %45 : vector<8x32xf32> to vector<8x4x8xf32>
    %51 = tpu.transpose %50, [1, 0, 2] : vector<8x4x8xf32> -> vector<4x8x8xf32>
    "tpu.trace_start"() <{level = 10 : i32, message = "hqd,hkd->hqk"}> : () -> ()
    %cst_23 = arith.constant dense<0.000000e+00> : vector<4x8x8xf32>
    %52 = tpu.matmul %47, %49, %cst_23 {dimension_numbers = #tpu.dot_dimension_numbers<[2], [2], [1], [1], [0, 0, 0, 1, 1, 1], [0], [0]>} : vector<4x8x8xf32>, vector<4x8x8xf32>, vector<4x8x8xf32> -> vector<4x8x8xf32>
    "tpu.trace_stop"() : () -> ()
    %53 = vector.shape_cast %9 : vector<8x8xf32> to vector<1x8x8xf32>
    %54 = vector.broadcast %53 : vector<1x8x8xf32> to vector<4x8x8xf32>
    %55 = arith.addf %52, %54 : vector<4x8x8xf32>
    %cst_24 = arith.constant dense<0xFF800000> : vector<4x8xf32>
    %56 = vector.multi_reduction <maximumf>, %55, %cst_24 [2] : vector<4x8x8xf32> to vector<4x8xf32>
    %57 = vector.shape_cast %56 : vector<4x8xf32> to vector<4x8x1xf32>
    %58 = vector.broadcast %57 : vector<4x8x1xf32> to vector<4x8x8xf32>
    %59 = arith.subf %55, %58 : vector<4x8x8xf32>
    %60 = math.exp %59 : vector<4x8x8xf32>
    %cst_25 = arith.constant dense<0.000000e+00> : vector<4x8xf32>
    %61 = vector.multi_reduction <add>, %60, %cst_25 [2] : vector<4x8x8xf32> to vector<4x8xf32>
    %62 = vector.shape_cast %61 : vector<4x8xf32> to vector<4x8x1xf32>
    %63 = tpu.reciprocal %62 {approx = true} : vector<4x8x1xf32> -> vector<4x8x1xf32>
    %64 = vector.broadcast %63 : vector<4x8x1xf32> to vector<4x8x8xf32>
    %65 = arith.mulf %60, %64 : vector<4x8x8xf32>
    "tpu.trace_start"() <{level = 10 : i32, message = "hqk,hkd->hqd"}> : () -> ()
    %cst_26 = arith.constant dense<0.000000e+00> : vector<4x8x8xf32>
    %66 = tpu.matmul %65, %51, %cst_26 {dimension_numbers = #tpu.dot_dimension_numbers<[2], [1], [1], [2], [0, 0, 0, 1, 1, 2], [0], [0]>} : vector<4x8x8xf32>, vector<4x8x8xf32>, vector<4x8x8xf32> -> vector<4x8x8xf32>
    "tpu.trace_stop"() : () -> ()
    %67 = tpu.transpose %66, [1, 0, 2] : vector<4x8x8xf32> -> vector<8x4x8xf32>
    %68 = vector.shape_cast %67 : vector<8x4x8xf32> to vector<8x32xf32>
    %69 = arith.truncf %68 : vector<8x32xf32> to vector<8x32xbf16>
    %c0_27 = arith.constant 0 : index
    %c0_28 = arith.constant 0 : index
    %c0_29 = arith.constant 0 : index
    %70 = vector.load %arg3[%c0_27, %c0_28, %c0_29] : memref<2x32x32xbf16, #tpu.memory_space<vmem>>, vector<1x32x32xbf16>
    %71 = vector.shape_cast %70 : vector<1x32x32xbf16> to vector<32x32xbf16>
    %cst_30 = arith.constant dense<0.000000e+00> : vector<8x32xf32>
    %72 = tpu.matmul %69, %71, %cst_30 {dimension_numbers = #tpu.dot_dimension_numbers<[1], [0], [0], [1], [0, 0, 1, 1], [], []>} : vector<8x32xbf16>, vector<32x32xbf16>, vector<8x32xf32> -> vector<8x32xf32>
    %73 = vector.extract_strided_slice %2 {offsets = [4, 0], sizes = [1, 32], strides = [1, 1]} : vector<14x32xf32> to vector<1x32xf32>
    %74 = vector.broadcast %73 : vector<1x32xf32> to vector<8x32xf32>
    %75 = arith.addf %72, %74 : vector<8x32xf32>
    %76 = arith.addf %1, %75 : vector<8x32xf32>
    %77 = vector.extract_strided_slice %2 {offsets = [2, 0], sizes = [1, 32], strides = [1, 1]} : vector<14x32xf32> to vector<1x32xf32>
    %78 = vector.extract_strided_slice %2 {offsets = [3, 0], sizes = [1, 32], strides = [1, 1]} : vector<14x32xf32> to vector<1x32xf32>
    %cst_31 = arith.constant dense<0.000000e+00> : vector<8xf32>
    %79 = vector.multi_reduction <add>, %76, %cst_31 [1] : vector<8x32xf32> to vector<8xf32>
    %80 = vector.shape_cast %79 : vector<8xf32> to vector<8x1xf32>
    %cst_32 = arith.constant 3.200000e+01 : f32
    %81 = vector.broadcast %cst_32 : f32 to vector<8x1xf32>
    %82 = arith.divf %80, %81 : vector<8x1xf32>
    %83 = vector.broadcast %82 : vector<8x1xf32> to vector<8x32xf32>
    %84 = arith.subf %76, %83 : vector<8x32xf32>
    %85 = arith.mulf %84, %84 : vector<8x32xf32>
    %cst_33 = arith.constant dense<0.000000e+00> : vector<8xf32>
    %86 = vector.multi_reduction <add>, %85, %cst_33 [1] : vector<8x32xf32> to vector<8xf32>
    %87 = vector.shape_cast %86 : vector<8xf32> to vector<8x1xf32>
    %cst_34 = arith.constant 3.200000e+01 : f32
    %88 = vector.broadcast %cst_34 : f32 to vector<8x1xf32>
    %89 = arith.divf %87, %88 : vector<8x1xf32>
    %90 = vector.broadcast %82 : vector<8x1xf32> to vector<8x32xf32>
    %91 = arith.subf %76, %90 : vector<8x32xf32>
    %cst_35 = arith.constant 9.99999974E-6 : f32
    %92 = vector.broadcast %cst_35 : f32 to vector<8x1xf32>
    %93 = arith.addf %89, %92 : vector<8x1xf32>
    %94 = math.rsqrt %93 : vector<8x1xf32>
    %95 = vector.broadcast %94 : vector<8x1xf32> to vector<8x32xf32>
    %96 = arith.mulf %91, %95 : vector<8x32xf32>
    %97 = vector.broadcast %77 : vector<1x32xf32> to vector<8x32xf32>
    %98 = arith.mulf %96, %97 : vector<8x32xf32>
    %99 = vector.broadcast %78 : vector<1x32xf32> to vector<8x32xf32>
    %100 = arith.addf %98, %99 : vector<8x32xf32>
    %101 = arith.truncf %100 : vector<8x32xf32> to vector<8x32xbf16>
    %c0_36 = arith.constant 0 : index
    %c0_37 = arith.constant 0 : index
    %c0_38 = arith.constant 0 : index
    %102 = vector.load %arg4[%c0_36, %c0_37, %c0_38] : memref<2x32x128xbf16, #tpu.memory_space<vmem>>, vector<1x32x128xbf16>
    %103 = vector.shape_cast %102 : vector<1x32x128xbf16> to vector<32x128xbf16>
    %cst_39 = arith.constant dense<0.000000e+00> : vector<8x128xf32>
    %104 = tpu.matmul %101, %103, %cst_39 {dimension_numbers = #tpu.dot_dimension_numbers<[1], [0], [0], [1], [0, 0, 1, 1], [], []>} : vector<8x32xbf16>, vector<32x128xbf16>, vector<8x128xf32> -> vector<8x128xf32>
    %105 = vector.extract_strided_slice %3 {offsets = [0, 0], sizes = [1, 128], strides = [1, 1]} : vector<3x128xf32> to vector<1x128xf32>
    %106 = vector.broadcast %105 : vector<1x128xf32> to vector<8x128xf32>
    %107 = arith.addf %104, %106 : vector<8x128xf32>
    %cst_40 = arith.constant 0.000000e+00 : f32
    %108 = vector.broadcast %cst_40 : f32 to vector<8x128xf32>
    %109 = arith.maximumf %107, %108 : vector<8x128xf32>
    %110 = arith.truncf %109 : vector<8x128xf32> to vector<8x128xbf16>
    %c0_41 = arith.constant 0 : index
    %c0_42 = arith.constant 0 : index
    %c0_43 = arith.constant 0 : index
    %111 = vector.load %arg5[%c0_41, %c0_42, %c0_43] : memref<2x128x32xbf16, #tpu.memory_space<vmem>>, vector<1x128x32xbf16>
    %112 = vector.shape_cast %111 : vector<1x128x32xbf16> to vector<128x32xbf16>
    %cst_44 = arith.constant dense<0.000000e+00> : vector<8x32xf32>
    %113 = tpu.matmul %110, %112, %cst_44 {dimension_numbers = #tpu.dot_dimension_numbers<[1], [0], [0], [1], [0, 0, 1, 1], [], []>} : vector<8x128xbf16>, vector<128x32xbf16>, vector<8x32xf32> -> vector<8x32xf32>
    %114 = vector.extract_strided_slice %2 {offsets = [5, 0], sizes = [1, 32], strides = [1, 1]} : vector<14x32xf32> to vector<1x32xf32>
    %115 = vector.broadcast %114 : vector<1x32xf32> to vector<8x32xf32>
    %116 = arith.addf %113, %115 : vector<8x32xf32>
    %117 = arith.addf %76, %116 : vector<8x32xf32>
    %118 = vector.extract_strided_slice %2 {offsets = [6, 0], sizes = [1, 32], strides = [1, 1]} : vector<14x32xf32> to vector<1x32xf32>
    %119 = vector.extract_strided_slice %2 {offsets = [7, 0], sizes = [1, 32], strides = [1, 1]} : vector<14x32xf32> to vector<1x32xf32>
    %cst_45 = arith.constant dense<0.000000e+00> : vector<8xf32>
    %120 = vector.multi_reduction <add>, %117, %cst_45 [1] : vector<8x32xf32> to vector<8xf32>
    %121 = vector.shape_cast %120 : vector<8xf32> to vector<8x1xf32>
    %cst_46 = arith.constant 3.200000e+01 : f32
    %122 = vector.broadcast %cst_46 : f32 to vector<8x1xf32>
    %123 = arith.divf %121, %122 : vector<8x1xf32>
    %124 = vector.broadcast %123 : vector<8x1xf32> to vector<8x32xf32>
    %125 = arith.subf %117, %124 : vector<8x32xf32>
    %126 = arith.mulf %125, %125 : vector<8x32xf32>
    %cst_47 = arith.constant dense<0.000000e+00> : vector<8xf32>
    %127 = vector.multi_reduction <add>, %126, %cst_47 [1] : vector<8x32xf32> to vector<8xf32>
    %128 = vector.shape_cast %127 : vector<8xf32> to vector<8x1xf32>
    %cst_48 = arith.constant 3.200000e+01 : f32
    %129 = vector.broadcast %cst_48 : f32 to vector<8x1xf32>
    %130 = arith.divf %128, %129 : vector<8x1xf32>
    %131 = vector.broadcast %123 : vector<8x1xf32> to vector<8x32xf32>
    %132 = arith.subf %117, %131 : vector<8x32xf32>
    %cst_49 = arith.constant 9.99999974E-6 : f32
    %133 = vector.broadcast %cst_49 : f32 to vector<8x1xf32>
    %134 = arith.addf %130, %133 : vector<8x1xf32>
    %135 = math.rsqrt %134 : vector<8x1xf32>
    %136 = vector.broadcast %135 : vector<8x1xf32> to vector<8x32xf32>
    %137 = arith.mulf %132, %136 : vector<8x32xf32>
    %138 = vector.broadcast %118 : vector<1x32xf32> to vector<8x32xf32>
    %139 = arith.mulf %137, %138 : vector<8x32xf32>
    %140 = vector.broadcast %119 : vector<1x32xf32> to vector<8x32xf32>
    %141 = arith.addf %139, %140 : vector<8x32xf32>
    %142 = arith.truncf %141 : vector<8x32xf32> to vector<8x32xbf16>
    %c3 = arith.constant 3 : index
    %c0_50 = arith.constant 0 : index
    %c0_51 = arith.constant 0 : index
    %143 = vector.load %arg2[%c3, %c0_50, %c0_51] : memref<6x32x32xbf16, #tpu.memory_space<vmem>>, vector<1x32x32xbf16>
    %144 = vector.shape_cast %143 : vector<1x32x32xbf16> to vector<32x32xbf16>
    %cst_52 = arith.constant dense<0.000000e+00> : vector<8x32xf32>
    %145 = tpu.matmul %142, %144, %cst_52 {dimension_numbers = #tpu.dot_dimension_numbers<[1], [0], [0], [1], [0, 0, 1, 1], [], []>} : vector<8x32xbf16>, vector<32x32xbf16>, vector<8x32xf32> -> vector<8x32xf32>
    %cst_53 = arith.constant 0.353553385 : f32
    %146 = vector.broadcast %cst_53 : f32 to vector<8x32xf32>
    %147 = arith.mulf %145, %146 : vector<8x32xf32>
    %c4 = arith.constant 4 : index
    %c0_54 = arith.constant 0 : index
    %c0_55 = arith.constant 0 : index
    %148 = vector.load %arg2[%c4, %c0_54, %c0_55] : memref<6x32x32xbf16, #tpu.memory_space<vmem>>, vector<1x32x32xbf16>
    %149 = vector.shape_cast %148 : vector<1x32x32xbf16> to vector<32x32xbf16>
    %cst_56 = arith.constant dense<0.000000e+00> : vector<8x32xf32>
    %150 = tpu.matmul %142, %149, %cst_56 {dimension_numbers = #tpu.dot_dimension_numbers<[1], [0], [0], [1], [0, 0, 1, 1], [], []>} : vector<8x32xbf16>, vector<32x32xbf16>, vector<8x32xf32> -> vector<8x32xf32>
    %c5 = arith.constant 5 : index
    %c0_57 = arith.constant 0 : index
    %c0_58 = arith.constant 0 : index
    %151 = vector.load %arg2[%c5, %c0_57, %c0_58] : memref<6x32x32xbf16, #tpu.memory_space<vmem>>, vector<1x32x32xbf16>
    %152 = vector.shape_cast %151 : vector<1x32x32xbf16> to vector<32x32xbf16>
    %cst_59 = arith.constant dense<0.000000e+00> : vector<8x32xf32>
    %153 = tpu.matmul %142, %152, %cst_59 {dimension_numbers = #tpu.dot_dimension_numbers<[1], [0], [0], [1], [0, 0, 1, 1], [], []>} : vector<8x32xbf16>, vector<32x32xbf16>, vector<8x32xf32> -> vector<8x32xf32>
    %154 = vector.shape_cast %147 : vector<8x32xf32> to vector<8x4x8xf32>
    %155 = tpu.transpose %154, [1, 0, 2] : vector<8x4x8xf32> -> vector<4x8x8xf32>
    %156 = vector.shape_cast %150 : vector<8x32xf32> to vector<8x4x8xf32>
    %157 = tpu.transpose %156, [1, 0, 2] : vector<8x4x8xf32> -> vector<4x8x8xf32>
    %158 = vector.shape_cast %153 : vector<8x32xf32> to vector<8x4x8xf32>
    %159 = tpu.transpose %158, [1, 0, 2] : vector<8x4x8xf32> -> vector<4x8x8xf32>
    "tpu.trace_start"() <{level = 10 : i32, message = "hqd,hkd->hqk"}> : () -> ()
    %cst_60 = arith.constant dense<0.000000e+00> : vector<4x8x8xf32>
    %160 = tpu.matmul %155, %157, %cst_60 {dimension_numbers = #tpu.dot_dimension_numbers<[2], [2], [1], [1], [0, 0, 0, 1, 1, 1], [0], [0]>} : vector<4x8x8xf32>, vector<4x8x8xf32>, vector<4x8x8xf32> -> vector<4x8x8xf32>
    "tpu.trace_stop"() : () -> ()
    %161 = vector.shape_cast %9 : vector<8x8xf32> to vector<1x8x8xf32>
    %162 = vector.broadcast %161 : vector<1x8x8xf32> to vector<4x8x8xf32>
    %163 = arith.addf %160, %162 : vector<4x8x8xf32>
    %cst_61 = arith.constant dense<0xFF800000> : vector<4x8xf32>
    %164 = vector.multi_reduction <maximumf>, %163, %cst_61 [2] : vector<4x8x8xf32> to vector<4x8xf32>
    %165 = vector.shape_cast %164 : vector<4x8xf32> to vector<4x8x1xf32>
    %166 = vector.broadcast %165 : vector<4x8x1xf32> to vector<4x8x8xf32>
    %167 = arith.subf %163, %166 : vector<4x8x8xf32>
    %168 = math.exp %167 : vector<4x8x8xf32>
    %cst_62 = arith.constant dense<0.000000e+00> : vector<4x8xf32>
    %169 = vector.multi_reduction <add>, %168, %cst_62 [2] : vector<4x8x8xf32> to vector<4x8xf32>
    %170 = vector.shape_cast %169 : vector<4x8xf32> to vector<4x8x1xf32>
    %171 = tpu.reciprocal %170 {approx = true} : vector<4x8x1xf32> -> vector<4x8x1xf32>
    %172 = vector.broadcast %171 : vector<4x8x1xf32> to vector<4x8x8xf32>
    %173 = arith.mulf %168, %172 : vector<4x8x8xf32>
    "tpu.trace_start"() <{level = 10 : i32, message = "hqk,hkd->hqd"}> : () -> ()
    %cst_63 = arith.constant dense<0.000000e+00> : vector<4x8x8xf32>
    %174 = tpu.matmul %173, %159, %cst_63 {dimension_numbers = #tpu.dot_dimension_numbers<[2], [1], [1], [2], [0, 0, 0, 1, 1, 2], [0], [0]>} : vector<4x8x8xf32>, vector<4x8x8xf32>, vector<4x8x8xf32> -> vector<4x8x8xf32>
    "tpu.trace_stop"() : () -> ()
    %175 = tpu.transpose %174, [1, 0, 2] : vector<4x8x8xf32> -> vector<8x4x8xf32>
    %176 = vector.shape_cast %175 : vector<8x4x8xf32> to vector<8x32xf32>
    %177 = arith.truncf %176 : vector<8x32xf32> to vector<8x32xbf16>
    %c1_64 = arith.constant 1 : index
    %c0_65 = arith.constant 0 : index
    %c0_66 = arith.constant 0 : index
    %178 = vector.load %arg3[%c1_64, %c0_65, %c0_66] : memref<2x32x32xbf16, #tpu.memory_space<vmem>>, vector<1x32x32xbf16>
    %179 = vector.shape_cast %178 : vector<1x32x32xbf16> to vector<32x32xbf16>
    %cst_67 = arith.constant dense<0.000000e+00> : vector<8x32xf32>
    %180 = tpu.matmul %177, %179, %cst_67 {dimension_numbers = #tpu.dot_dimension_numbers<[1], [0], [0], [1], [0, 0, 1, 1], [], []>} : vector<8x32xbf16>, vector<32x32xbf16>, vector<8x32xf32> -> vector<8x32xf32>
    %181 = vector.extract_strided_slice %2 {offsets = [10, 0], sizes = [1, 32], strides = [1, 1]} : vector<14x32xf32> to vector<1x32xf32>
    %182 = vector.broadcast %181 : vector<1x32xf32> to vector<8x32xf32>
    %183 = arith.addf %180, %182 : vector<8x32xf32>
    %184 = arith.addf %117, %183 : vector<8x32xf32>
    %185 = vector.extract_strided_slice %2 {offsets = [8, 0], sizes = [1, 32], strides = [1, 1]} : vector<14x32xf32> to vector<1x32xf32>
    %186 = vector.extract_strided_slice %2 {offsets = [9, 0], sizes = [1, 32], strides = [1, 1]} : vector<14x32xf32> to vector<1x32xf32>
    %cst_68 = arith.constant dense<0.000000e+00> : vector<8xf32>
    %187 = vector.multi_reduction <add>, %184, %cst_68 [1] : vector<8x32xf32> to vector<8xf32>
    %188 = vector.shape_cast %187 : vector<8xf32> to vector<8x1xf32>
    %cst_69 = arith.constant 3.200000e+01 : f32
    %189 = vector.broadcast %cst_69 : f32 to vector<8x1xf32>
    %190 = arith.divf %188, %189 : vector<8x1xf32>
    %191 = vector.broadcast %190 : vector<8x1xf32> to vector<8x32xf32>
    %192 = arith.subf %184, %191 : vector<8x32xf32>
    %193 = arith.mulf %192, %192 : vector<8x32xf32>
    %cst_70 = arith.constant dense<0.000000e+00> : vector<8xf32>
    %194 = vector.multi_reduction <add>, %193, %cst_70 [1] : vector<8x32xf32> to vector<8xf32>
    %195 = vector.shape_cast %194 : vector<8xf32> to vector<8x1xf32>
    %cst_71 = arith.constant 3.200000e+01 : f32
    %196 = vector.broadcast %cst_71 : f32 to vector<8x1xf32>
    %197 = arith.divf %195, %196 : vector<8x1xf32>
    %198 = vector.broadcast %190 : vector<8x1xf32> to vector<8x32xf32>
    %199 = arith.subf %184, %198 : vector<8x32xf32>
    %cst_72 = arith.constant 9.99999974E-6 : f32
    %200 = vector.broadcast %cst_72 : f32 to vector<8x1xf32>
    %201 = arith.addf %197, %200 : vector<8x1xf32>
    %202 = math.rsqrt %201 : vector<8x1xf32>
    %203 = vector.broadcast %202 : vector<8x1xf32> to vector<8x32xf32>
    %204 = arith.mulf %199, %203 : vector<8x32xf32>
    %205 = vector.broadcast %185 : vector<1x32xf32> to vector<8x32xf32>
    %206 = arith.mulf %204, %205 : vector<8x32xf32>
    %207 = vector.broadcast %186 : vector<1x32xf32> to vector<8x32xf32>
    %208 = arith.addf %206, %207 : vector<8x32xf32>
    %209 = arith.truncf %208 : vector<8x32xf32> to vector<8x32xbf16>
    %c1_73 = arith.constant 1 : index
    %c0_74 = arith.constant 0 : index
    %c0_75 = arith.constant 0 : index
    %210 = vector.load %arg4[%c1_73, %c0_74, %c0_75] : memref<2x32x128xbf16, #tpu.memory_space<vmem>>, vector<1x32x128xbf16>
    %211 = vector.shape_cast %210 : vector<1x32x128xbf16> to vector<32x128xbf16>
    %cst_76 = arith.constant dense<0.000000e+00> : vector<8x128xf32>
    %212 = tpu.matmul %209, %211, %cst_76 {dimension_numbers = #tpu.dot_dimension_numbers<[1], [0], [0], [1], [0, 0, 1, 1], [], []>} : vector<8x32xbf16>, vector<32x128xbf16>, vector<8x128xf32> -> vector<8x128xf32>
    %213 = vector.extract_strided_slice %3 {offsets = [1, 0], sizes = [1, 128], strides = [1, 1]} : vector<3x128xf32> to vector<1x128xf32>
    %214 = vector.broadcast %213 : vector<1x128xf32> to vector<8x128xf32>
    %215 = arith.addf %212, %214 : vector<8x128xf32>
    %cst_77 = arith.constant 0.000000e+00 : f32
    %216 = vector.broadcast %cst_77 : f32 to vector<8x128xf32>
    %217 = arith.maximumf %215, %216 : vector<8x128xf32>
    %218 = arith.truncf %217 : vector<8x128xf32> to vector<8x128xbf16>
    %c1_78 = arith.constant 1 : index
    %c0_79 = arith.constant 0 : index
    %c0_80 = arith.constant 0 : index
    %219 = vector.load %arg5[%c1_78, %c0_79, %c0_80] : memref<2x128x32xbf16, #tpu.memory_space<vmem>>, vector<1x128x32xbf16>
    %220 = vector.shape_cast %219 : vector<1x128x32xbf16> to vector<128x32xbf16>
    %cst_81 = arith.constant dense<0.000000e+00> : vector<8x32xf32>
    %221 = tpu.matmul %218, %220, %cst_81 {dimension_numbers = #tpu.dot_dimension_numbers<[1], [0], [0], [1], [0, 0, 1, 1], [], []>} : vector<8x128xbf16>, vector<128x32xbf16>, vector<8x32xf32> -> vector<8x32xf32>
    %222 = vector.extract_strided_slice %2 {offsets = [11, 0], sizes = [1, 32], strides = [1, 1]} : vector<14x32xf32> to vector<1x32xf32>
    %223 = vector.broadcast %222 : vector<1x32xf32> to vector<8x32xf32>
    %224 = arith.addf %221, %223 : vector<8x32xf32>
    %225 = arith.addf %184, %224 : vector<8x32xf32>
    %226 = vector.extract_strided_slice %2 {offsets = [12, 0], sizes = [1, 32], strides = [1, 1]} : vector<14x32xf32> to vector<1x32xf32>
    %227 = vector.extract_strided_slice %2 {offsets = [13, 0], sizes = [1, 32], strides = [1, 1]} : vector<14x32xf32> to vector<1x32xf32>
    %cst_82 = arith.constant dense<0.000000e+00> : vector<8xf32>
    %228 = vector.multi_reduction <add>, %225, %cst_82 [1] : vector<8x32xf32> to vector<8xf32>
    %229 = vector.shape_cast %228 : vector<8xf32> to vector<8x1xf32>
    %cst_83 = arith.constant 3.200000e+01 : f32
    %230 = vector.broadcast %cst_83 : f32 to vector<8x1xf32>
    %231 = arith.divf %229, %230 : vector<8x1xf32>
    %232 = vector.broadcast %231 : vector<8x1xf32> to vector<8x32xf32>
    %233 = arith.subf %225, %232 : vector<8x32xf32>
    %234 = arith.mulf %233, %233 : vector<8x32xf32>
    %cst_84 = arith.constant dense<0.000000e+00> : vector<8xf32>
    %235 = vector.multi_reduction <add>, %234, %cst_84 [1] : vector<8x32xf32> to vector<8xf32>
    %236 = vector.shape_cast %235 : vector<8xf32> to vector<8x1xf32>
    %cst_85 = arith.constant 3.200000e+01 : f32
    %237 = vector.broadcast %cst_85 : f32 to vector<8x1xf32>
    %238 = arith.divf %236, %237 : vector<8x1xf32>
    %239 = vector.broadcast %231 : vector<8x1xf32> to vector<8x32xf32>
    %240 = arith.subf %225, %239 : vector<8x32xf32>
    %cst_86 = arith.constant 9.99999974E-6 : f32
    %241 = vector.broadcast %cst_86 : f32 to vector<8x1xf32>
    %242 = arith.addf %238, %241 : vector<8x1xf32>
    %243 = math.rsqrt %242 : vector<8x1xf32>
    %244 = vector.broadcast %243 : vector<8x1xf32> to vector<8x32xf32>
    %245 = arith.mulf %240, %244 : vector<8x32xf32>
    %246 = vector.broadcast %226 : vector<1x32xf32> to vector<8x32xf32>
    %247 = arith.mulf %245, %246 : vector<8x32xf32>
    %248 = vector.broadcast %227 : vector<1x32xf32> to vector<8x32xf32>
    %249 = arith.addf %247, %248 : vector<8x32xf32>
    %250 = arith.truncf %249 : vector<8x32xf32> to vector<8x32xbf16>
    %c0_87 = arith.constant 0 : index
    %c0_88 = arith.constant 0 : index
    %251 = vector.load %arg6[%c0_87, %c0_88] : memref<32x128xbf16, #tpu.memory_space<vmem>>, vector<32x128xbf16>
    %cst_89 = arith.constant dense<0.000000e+00> : vector<8x128xf32>
    %252 = tpu.matmul %250, %251, %cst_89 {dimension_numbers = #tpu.dot_dimension_numbers<[1], [0], [0], [1], [0, 0, 1, 1], [], []>} : vector<8x32xbf16>, vector<32x128xbf16>, vector<8x128xf32> -> vector<8x128xf32>
    %253 = vector.extract_strided_slice %3 {offsets = [2, 0], sizes = [1, 128], strides = [1, 1]} : vector<3x128xf32> to vector<1x128xf32>
    %254 = vector.broadcast %253 : vector<1x128xf32> to vector<8x128xf32>
    %255 = arith.addf %252, %254 : vector<8x128xf32>
    %c0_90 = arith.constant 0 : index
    %c0_91 = arith.constant 0 : index
    %c0_92 = arith.constant 0 : index
    %256 = vector.load %arg9[%c0_90, %c0_91, %c0_92] : memref<1x8x128xf32, #tpu.memory_space<vmem>>, vector<1x8x128xf32>
    %257 = vector.shape_cast %256 : vector<1x8x128xf32> to vector<8x128xf32>
    %258 = vector.shape_cast %255 : vector<8x128xf32> to vector<1x8x128xf32>
    tpu.vector_store %arg9[%c0_90, %c0_91, %c0_92], %258 {strides = array<i32>} : memref<1x8x128xf32, #tpu.memory_space<vmem>>, vector<1x8x128xf32>,
    return
  }
  func.func @transform_0(%arg0: i32) -> (i32, i32, i32) {
    %c0_i32 = arith.constant 0 : i32
    %c0_i32_0 = arith.constant 0 : i32
    %c0_i32_1 = arith.constant 0 : i32
    return %arg0, %c0_i32, %c0_i32_0 : i32, i32, i32
  }
  func.func @transform_1(%arg0: i32) -> (i32, i32, i32) {
    %c0_i32 = arith.constant 0 : i32
    %c0_i32_0 = arith.constant 0 : i32
    %c0_i32_1 = arith.constant 0 : i32
    %c0_i32_2 = arith.constant 0 : i32
    return %c0_i32, %c0_i32_0, %c0_i32_1 : i32, i32, i32
  }
  func.func @transform_2(%arg0: i32) -> (i32, i32, i32) {
    %c0_i32 = arith.constant 0 : i32
    %c0_i32_0 = arith.constant 0 : i32
    %c0_i32_1 = arith.constant 0 : i32
    %c0_i32_2 = arith.constant 0 : i32
    return %c0_i32, %c0_i32_0, %c0_i32_1 : i32, i32, i32
  }
  func.func @transform_3(%arg0: i32) -> (i32, i32, i32) {
    %c0_i32 = arith.constant 0 : i32
    %c0_i32_0 = arith.constant 0 : i32
    %c0_i32_1 = arith.constant 0 : i32
    %c0_i32_2 = arith.constant 0 : i32
    return %c0_i32, %c0_i32_0, %c0_i32_1 : i32, i32, i32
  }
  func.func @transform_4(%arg0: i32) -> (i32, i32, i32) {
    %c0_i32 = arith.constant 0 : i32
    %c0_i32_0 = arith.constant 0 : i32
    %c0_i32_1 = arith.constant 0 : i32
    %c0_i32_2 = arith.constant 0 : i32
    return %c0_i32, %c0_i32_0, %c0_i32_1 : i32, i32, i32
  }
  func.func @transform_5(%arg0: i32) -> (i32, i32) {
    %c0_i32 = arith.constant 0 : i32
    %c0_i32_0 = arith.constant 0 : i32
    %c0_i32_1 = arith.constant 0 : i32
    return %c0_i32, %c0_i32_0 : i32, i32
  }
  func.func @transform_6(%arg0: i32) -> (i32, i32) {
    %c0_i32 = arith.constant 0 : i32
    %c0_i32_0 = arith.constant 0 : i32
    %c0_i32_1 = arith.constant 0 : i32
    return %c0_i32, %c0_i32_0 : i32, i32
  }
  func.func @transform_7(%arg0: i32) -> (i32, i32) {
    %c0_i32 = arith.constant 0 : i32
    %c0_i32_0 = arith.constant 0 : i32
    %c0_i32_1 = arith.constant 0 : i32
    return %c0_i32, %c0_i32_0 : i32, i32
  }
  func.func @transform_8(%arg0: i32) -> (i32, i32, i32) {
    %c0_i32 = arith.constant 0 : i32
    %c0_i32_0 = arith.constant 0 : i32
    %c0_i32_1 = arith.constant 0 : i32
    return %arg0, %c0_i32, %c0_i32_0 : i32, i32, i32
  }
}

</mosaic_0001>

<bundles_post_ra>
// kernel: tpu_custom_call.1
= control target key start
LH: loop header
LB: loop body
LE: loop exit
PB: predicated region body
PF: predicated region fallthrough
CT: control target
= control target key end

     0   :  { %s5517_s0 = inlined_call_operand.hbm [shape: f32[2,8,32], index: 0, kind: input, shape index: {}]   ;;  %s5518_s1 = inlined_call_operand.vmem [shape: bf16[6,32,32], index: 1, kind: input, shape index: {}]   ;;  %s5519_s2 = inlined_call_operand.vmem [shape: bf16[2,32,32], index: 2, kind: input, shape index: {}]   ;;  %s5520_s3 = inlined_call_operand.vmem [shape: bf16[2,32,128], index: 3, kind: input, shape index: {}]   ;;  %s5521_s4 = inlined_call_operand.vmem [shape: bf16[2,128,32], index: 4, kind: input, shape index: {}]   ;;  %s5522_s5 = inlined_call_operand.hbm [shape: bf16[32,128], index: 5, kind: input, shape index: {}]   ;;  %s5523_s6 = inlined_call_operand.hbm [shape: f32[14,32], index: 6, kind: input, shape index: {}]   ;;  %s5524_s7 = inlined_call_operand.vmem [shape: f32[3,128], index: 7, kind: input, shape index: {}]   ;;  %s5525_s8 = inlined_call_operand.hbm [shape: f32[2,8,128], index: 8, kind: output, shape index: {}]  }
   0x1   :  { %5530 = sst [smem:[#allocation13_spill]] %s5522_s5 }
   0x2   :  { %5531 = sst [smem:[#allocation14_spill]] %s5523_s6 }
   0x3   :  { %13 = vsyncpa [#allocation3], 0 }
   0x4   :  { %15 = vsyncpa [#allocation3 + $0x1], 0 }
   0x5   :  { %16 = vsyncpa [#allocation6], 0 }
   0x6   :  { %17 = vsyncpa [#allocation4], 0 }
   0x7   :  { %19 = vsyncpa [#allocation4 + $0x1], 0  ;;  %s4757_s27 = smov 0   ;;  %s4759_s28 = smov 0  }
   0x8   :  { %s4761_s29 = smov 0   ;;  %s4763_s30 = smov 0  }
   0x9 LB: > { %s4778_s9 = sadd.s32 4294967295, %s4691_s30   ;;  %s3941_s10 = sadd.s32 4294967294, %s4691_s30   ;;  %s4691_s30 = sphi %s4763_s30, %s5553_s30   ;;  %s4687_s29 = sphi %s4761_s29, %s5552_s29   ;;  %s4683_s28 = sphi %s4759_s28, %s5551_s28   ;;  %s4679_s27 = sphi %s4757_s27, %s5550_s27  }
   0xa   : > { %p45_p0 = scmp.ne.s32.totalorder %s4683_s28, %s4679_s27  ;;  %p5526_p1 = scmp.eq.s32.totalorder %s4778_s9, 0 }
   0xb   : > { %p222_p3 = scmp.eq.s32.totalorder %s3941_s10, 1  ;;  %p3942_p5 = scmp.ge.s32.totalorder %s4691_s30, 1 }
   0xc   : > { %p4787_p4 = por %p5526_p1, %p45_p0  ;;  %p229_p7 = scmp.lt.s32.totalorder %s4691_s30, 3 }
   0xd   : > { %p4792_p6 = por %p222_p3, %p45_p0  ;;  %s4693_s14 = smov [#allocation5]  }
   0xe   : > { %s5532_s11 = scalar_select %p4787_p4, 1, 0 }
   0xf   : > { %s5533_s12 = scalar_select %p4792_p6, 1, 0 }
  0x10   : > { %p4797_p8 = pnand %p3942_p5, %p229_p7  ;;  %s253_s15 = sshll.u32 %s4693_s14, 4  ;;  %s254_s15 = int_to_ptr.vmem [resolvable:$true] %s253_s15 }
  0x11   : > { %s4694_s17 = smov [#allocation7]   ;;  %s4554_s19 = scalar_lea.vmem %s254_s15, 256 }
  0x12   : > { %s5534_s13 = scalar_select %p4797_p8, 1, 0 }
  0x13   : > { %p4393_p9 = pneg %p4797_p8  ;;  %s266_s18 = sshll.u32 %s4694_s17, 4  ;;  %s267_s18 = int_to_ptr.vmem [resolvable:$true] %s266_s18 }
  0x14   : > { %p4555_p13 = scmp.ne.s32.totalorder %s254_s15, %s4554_s19  ;;  %p4562_p5 = scmp.lt.s32.totalorder %s254_s15, %s254_s15 }
  0x15   : > { %p4806_p11 = pnand %p4393_p9, %p5526_p1  ;;  %p4563_p7 = scmp.lt.s32.totalorder %s4554_s19, %s4554_s19 }
  0x17   : > { %p4545_p12 = pneg %p4806_p11  ;;  %p4564_p10 = por %p4563_p7, %p4562_p5 }
  0x19   : > { %p4557_p0 = pnand %p4555_p13, %p4545_p12 }
  0x1b   : > { %p4558_p3 = pneg %p4557_p0 }
  0x1d   : > { %p4565_p9 = pnand %p4564_p10, %p4558_p3 }
  0x1f   : > { %4568 = shalt.err (!%p4565_p9)
}
  0x20   : > { %s4695_s20 = smov 64   ;;  %s4696_s21 = smov 4  }
  0x21   : > { %s5536_s5 = sld [smem:[#allocation13_spill]]  ;;  %s4580_s24 = scalar_lea.vmem %s267_s18, 256 }
  0x22   : > { %p4581_p1 = scmp.ne.s32.totalorder %s267_s18, %s4580_s24  ;;  %p4588_p2 = scmp.lt.s32.totalorder %s267_s18, %s267_s18 }
  0x23   : > { %p4589_p6 = scmp.lt.s32.totalorder %s4580_s24, %s4580_s24 }
  0x24   : > { %p4583_p13 = pnand %p4581_p1, %p4545_p12 }
  0x25   : > { %p4590_p5 = por %p4589_p6, %p4588_p2 }
  0x26   : > { %p4584_p0 = pneg %p4583_p13 }
  0x27   : > { %4396 = dma.hbm_to_vmem [thread:$0]  (!%p4806_p11), %s5536_s5, 256, %s254_s15, [#allocation6], %s4695_s20, %s4695_s20, %s4696_s21  }
  0x28   : > { %p4591_p10 = pnand %p4590_p5, %p4584_p0 }
  0x2a   : > { %4594 = shalt.err (!%p4591_p10)
}
  0x2b   : > { %s4697_s25 = smov 128   ;;  %s4698_s26 = smov 8  }
  0x2c   : > { %s5537_s6 = sld [smem:[#allocation14_spill]]  ;;  %s4829_s15 = sadd.s32 1, %s4691_s30  }
  0x2d   : > { %s29_s17 = ssub.s32 %s4691_s30, %s4829_s15  ;;  %s32_s19 = sadd.s32 1, %s4687_s29 }
  0x2e   : > { %p30_p1 = scmp.eq.s32.totalorder %s29_s17, 0  ;;  %p39_p2 = scmp.ne.s32.totalorder %s4687_s29, %s4683_s28 }
  0x2f   : > { %p40_p6 = scmp.eq.s32.totalorder %s4691_s30, 0  ;;  %p5539_p3 = scmp.eq.s32.totalorder %s4778_s9, 1 }
  0x30   : > { %s4838_s20 = scalar_select %p30_p1, %s4687_s29, %s32_s19  }
  0x31   : > { %p41_p12 = por %p40_p6, %p39_p2  ;;  %p4842_p7 = por %p5539_p3, %p39_p2 }
  0x32   : > { %4399 = dma.hbm_to_vmem [thread:$0]  (!%p4806_p11), %s5537_s6, 256, %s267_s18, [#allocation6], %s4697_s25, %s4697_s25, %s4698_s26  }
  0x33   : > { %5538 = sst [smem:[#allocation12_spill]] %s4838_s20  ;;  %p4410_p9 = scmp.lt.s32.totalorder %s4691_s30, 2 }
  0x34   : > { %s5540_s21 = scalar_select %p4842_p7, 1, 0 }
  0x35   : > { %s283_s16 = sand.u32 1, %s4687_s29   ;;  %s3947_s18 = sshll.u32 %s4691_s30, 7 }
  0x36   : > { %s3946_s22 = sshll.u32 %s283_s16, 3  ;;  %s4852_s25 = scalar_lea.hbm %s5517_s0, %s3947_s18 }
  0x37   : > { %s287_s26 = scalar_lea.vmem [#allocation2], %s3946_s22  ;;  %p4854_p11 = pnand %p4410_p9, %p41_p12 }
  0x38   : > { %s294_s10 = sshll.u32 %s287_s26, 4  ;;  %s284_s17 = scalar_lea.sflag [#allocation3], %s283_s16  ;;  %s295_s10 = int_to_ptr.vmem [resolvable:$true] %s294_s10 }
  0x39   : > { %s4595_s19 = scalar_lea.hbm %s4852_s25, 128  ;;  %p4597_p0 = pneg %p4854_p11 }
  0x3a   : > { %p4596_p13 = scmp.ne.s32.totalorder %s4852_s25, %s4595_s19  ;;  %s4600_s24 = scalar_lea.hbm %s5517_s0, 256 }
  0x3b   : > { %p4601_p1 = scmp.lt.s32.totalorder %s4852_s25, %s5517_s0  ;;  %p4602_p2 = scmp.lt.s32.totalorder %s4600_s24, %s4595_s19 }
  0x3c   : > { %p4598_p5 = pnand %p4597_p0, %p4596_p13 }
  0x3d   : > { %p4603_p6 = por %p4602_p2, %p4601_p1 }
  0x3e   : > { %p4599_p10 = pneg %p4598_p5 }
  0x40   : > { %p4604_p12 = pnand %p4603_p6, %p4599_p10 }
  0x42   : > { %4607 = shalt.err (!%p4604_p12)
}
  0x43   : > { %s4608_s26 = scalar_lea.vmem %s295_s10, 128  ;;  %s4699_s16 = smov [#allocation2]  }
  0x44   : > { %p4609_p3 = scmp.ne.s32.totalorder %s295_s10, %s4608_s26  ;;  %s4613_s6 = sshll.u32 %s4699_s16, 4  ;;  %s4614_s6 = int_to_ptr.vmem [resolvable:$false] %s4613_s6 }
  0x45   : > { %s4615_s20 = scalar_lea.vmem %s4614_s6, 256  ;;  %p4616_p13 = scmp.lt.s32.totalorder %s295_s10, %s4614_s6 }
  0x46   : > { %p4611_p9 = pnand %p4609_p3, %p4597_p0  ;;  %p4617_p5 = scmp.lt.s32.totalorder %s4615_s20, %s4608_s26 }
  0x48   : > { %p4612_p7 = pneg %p4611_p9  ;;  %p4618_p4 = por %p4617_p5, %p4616_p13 }
  0x4a   : > { %p4619_p8 = pnand %p4618_p4, %p4612_p7 }
  0x4c   : > { %4622 = shalt.err (!%p4619_p8)
}
  0x4d   : > { %4403 = dma.hbm_to_vmem [thread:$0]  (!%p4854_p11), %s4852_s25, 128, %s295_s10, %s284_s17  }
  0x4e   : > { %p5542_p10 = scmp.ne.s32.totalorder %s5534_s13, 0 }
  0x4f   : > { %s4875_s5 = sand.u32 (!%p5542_p10), 1, %s4683_s28   ;;  %p5543_p4 = scmp.ne.s32.totalorder (!%p5542_p10), %s5532_s11, 0 }
  0x50   : > { %303 = sbr.rel (%p5542_p10) target bundleno = 5497 (0x1579), region = 52  ;;  %s3949_s19 = sshll.u32 (!%p5542_p10), %s4875_s5, 3 }
  0x51   : > { %s306_s6 = scalar_lea.sflag (!%p5542_p10), [#allocation3], %s4875_s5  ;;  %s309_s20 = scalar_lea.vmem (!%p5542_p10), [#allocation2], %s3949_s19 }
  0x55   : > { %4666 = dma.done.wait (%p5543_p4), %s306_s6, 128  }
  0x56   : > { %4668 = vsyncadd (%p5543_p4), %s306_s6, 4294967168  ;;  %p5544_p8 = scmp.eq.s32.totalorder %s4778_s9, 0 }
  0x58   : > { %4670 = dma.done.wait (%p5544_p8), [#allocation6], 512   ;;  %p5545_p7 = pmov %p5544_p8 }
  0x59   : > { %vm361_vm0 = vcmask 261120   ;;  %v4889_v0 = vld [vmem:[%s309_s20] sm:$0xff]  ;;  %v4700_v9 = vmov 0.0   ;;  %vm4701_vm1 = vmmov 0   ;;  %v355_v15 = vlaneseq  ;;  %v4467_v26 = vld [vmem:[%s5518_s1 + $0x18] sm:$0xff]   ;;  %v4468_v28 = vld [vmem:[%s5518_s1 + $0x10] sm:$0xff]  }
  0x5a   : > { %4672 = vsyncadd (%p5545_p7), [#allocation6], 4294966784  ;;  %v362_v1 = vsel %vm361_vm0, %v4889_v0, 0.0  ;;  %v4463_v7 = vld [vmem:[%s5518_s1 + $0x8] sm:$0xff]   ;;  %4173 = vmatprep.subr.bf16.mxu1 %v4700_v9  ;;  %4189 = vmatprep.subr.bf16.mxu0 %v4700_v9  ;;  %v4465_v10 = vld [vmem:[%s5518_s1] sm:$0xff]   ;;  %s4702_s6 = smov 104  }
  0x5b   : > { %363 = vadd.xlane.f32.xlu0 %v362_v1  ;;  %v4464_v8 = vld [vmem:[%s5518_s1 + $0x28] sm:$0xff]   ;;  %4174 = vmatpush3.bf16.msra.mxu1 %v4463_v7  ;;  %v4466_v11 = vld [vmem:[%s5518_s1 + $0x20] sm:$0xff]   ;;  %v4918_v16 = vshrl.u32 %v355_v15, 7  ;;  %s4703_s20 = smov 120   ;;  %s4704_s11 = smov 112   ;;  %vm999_vm2 = vcmask 64512  }
  0x5c   : > { %4190 = vmatpush3.bf16.msra.mxu0 %v4464_v8  ;;  %4175 = vmatprep.subr.bf16.mxu1 %v4700_v9  ;;  %v4923_v18 = vld [vmem:[#allocation7] sm:$0xff]  ;;  %v4705_v42 = vmov 1983009808   ;;  %v4706_v44 = vmov 1934713408   ;;  %s4708_s17 = smov 16  }
  0x5d   : > { %4191 = vmatprep.subr.bf16.mxu0 %v4700_v9  ;;  %4177 = vmatprep.mubr.msk.bf16.mxu1 %vm4701_vm1, %v4700_v9  ;;  %v4921_v17 = vsub.s32 0, %v4918_v16  ;;  %v4926_v19 = vsub.s32 1, %v4918_v16  ;;  %v574_v43 = vunpack.c.l.s4 %v4705_v42  ;;  %v606_v45 = vunpack.c.l.s4 %v4706_v44  ;;  %s4709_s18 = smov 8   ;;  %s4710_s23 = smov 24  }
  0x5e   : > { %4193 = vmatprep.mubr.msk.bf16.mxu0 %vm4701_vm1, %v4700_v9  ;;  %vm1789_vm4 = vcmask 130048   ;;  %vm1791_vm5 = vcmask 195584   ;;  %s4087_s10 = sshll.u32 %s4778_s9, 7  ;;  %s349_s14 = scalar_lea.vmem [#allocation8], %s3949_s19 }
  0x5f   : > { %4176 = vmatpush3.bf16.msra.mxu1 %v4465_v10  ;;  %v379_v20 = vrot.slane %v4923_v18, %v4921_v17  ;;  %v384_v23 = vrot.slane %v4923_v18, %v4926_v19  ;;  %v575_v46 = vunpack.c.0.s8 %v574_v43  ;;  %v607_v49 = vunpack.c.0.s8 %v606_v45  ;;  %s3852_s24 = sshll.u32 %s349_s14, 4  ;;  %p5546_p0 = scmp.ne.s32.totalorder %s5540_s21, 0  ;;  %s5476_s24 = int_to_ptr.vmem [resolvable:$true] %s3852_s24 }
  0x60   : > { %4192 = vmatpush3.bf16.msra.mxu0 %v4466_v11  ;;  %4181 = vmatprep.subr.bf16.mxu1 %v4700_v9  ;;  %s4623_s9 = scalar_lea.vmem %s5476_s24, 128  ;;  %s4711_s19 = smov [#allocation8]  }
  0x61   : > { %4217 = vmatprep.subr.mxu0 %v4700_v9  ;;  %v4958_v50 = vsub.s32 %v575_v46, %v4918_v16  ;;  %v4961_v56 = vsub.s32 %v607_v49, %v4918_v16  ;;  %p4624_p11 = scmp.ne.s32.totalorder %s5476_s24, %s4623_s9  ;;  %s4627_s26 = sshll.u32 %s4711_s19, 4  ;;  %s4628_s26 = int_to_ptr.vmem [resolvable:$false] %s4627_s26 }
  0x62   : > { %p4630_p6 = scmp.lt.s32.totalorder %s5476_s24, %s4628_s26 }
  0x63   : > { %p4625_p1 = pnand %p4624_p11, %p5546_p0 }
  0x65   : > { %p4626_p2 = pneg %p4625_p1 }
  0xe4   : > { %v364_v2 = vpop.xlane.xlu0 %363 }
  0xe5   : > { %v366_v3 = vmul.f32 0.03125, %v364_v2 }
  0xe7   : > { %v367_v4 = vsub.f32 %v4889_v0, %v366_v3 }
  0xe9   : > { %v368_v5 = vmul.f32 %v367_v4, %v367_v4 }
  0xeb   : > { %v369_v6 = vsel %vm361_vm0, %v368_v5, 0.0 }
  0xec   : > { %370 = vadd.xlane.f32.xlu0 %v369_v6 }
 0x175   : > { %v371_v12 = vpop.xlane.xlu0 %370 }
 0x176   : > { %v372_v13 = vmul.f32 0.03125, %v371_v12 }
 0x178   : > { %v373_v14 = vadd.f32 1e-05, %v372_v13 }
 0x17a   : > { %4501 = vrsqrt.f32 %v373_v14 }
 0x187   : > { %v4502_v21 = vpop.eup %4501 }
 0x188   : > { %v375_v22 = vmul.f32 %v4502_v21, %v367_v4 }
 0x18a   : > { %v380_v24 = vmul.f32 %v379_v20, %v375_v22 }
 0x18c   : > { %v385_v25 = vadd.f32 %v384_v23, %v380_v24 }
 0x18e   : > { %v386_v27 = vpack.c.bf16 %v385_v25, %v385_v25 }
 0x190   : > { %4178 = vmatmul.mubr.msk.bf16.vlgmr.msra.gmra.mxu1 %vm361_vm0, %v386_v27  ;;  %4194 = vmatmul.mubr.msk.bf16.vlgmr.msra.gmra.mxu0 %vm361_vm0, %v386_v27 }
 0x191   : > { %4182 = vmatpush3.bf16.msra.mxu1 %v4467_v26  ;;  %4185 = vmatprep.mubr.msk.bf16.mxu1 %vm4701_vm1, %v4700_v9 }
 0x192   : > { %4183 = vmatprep.subr.bf16.mxu1 %v4700_v9  ;;  %4219 = vmatprep.mubr.msk.f32.mxu0 %vm4701_vm1, %v4700_v9 }
 0x195   : > { %4184 = vmatpush3.bf16.msra.mxu1 %v4468_v28 }
 0x196   : > { %4197 = vmatprep.subr.mxu1 %v4700_v9 }
 0x198   : > { %4186 = vmatmul.mubr.msk.bf16.vlgmr.msra.gmra.mxu1 %vm361_vm0, %v386_v27 }
 0x199   : > { %4199 = vmatprep.mubr.msk.f32.mxu1 %vm4701_vm1, %v4700_v9 }
 0x250   : > { %v440_v29 = vpop.f32.mrf.mxu1  ;;  %v4949_v30 = vpop.f32.mrf.mxu0 }
 0x251   : > { %v446_v41 = vmul.f32 0.35355338, %v440_v29 }
 0x252   : > { %v4179_v31 = vpop.f32.mrf.mxu1  ;;  %v4195_v32 = vpop.f32.mrf.mxu0 }
 0x254   : > { %v443_v33 = vpop.f32.mrf.mxu1  ;;  %v558_v34 = vpop.f32.mrf.mxu0 }
 0x256   : > { %v4180_v35 = vpop.f32.mrf.mxu1  ;;  %v4196_v36 = vpop.f32.mrf.mxu0 }
 0x258   : > { %v498_v37 = vpop.f32.mrf.mxu1 }
 0x259   : > { %714 = vrot.lane.b32.xlu0 %v498_v37, %s4702_s6  ;;  %708 = vrot.lane.b32.xlu1 %v498_v37, %s4703_s20 }
 0x25a   : > { %v4187_v38 = vpop.f32.mrf.mxu1 }
 0x25c   : > { %v501_v39 = vpop.f32.mrf.mxu1 }
 0x25d   : > { %711 = vrot.lane.b32.xlu1 %v498_v37, %s4704_s11 }
 0x25e   : > { %v4188_v40 = vpop.f32.mrf.mxu1 }
 0x261   : > { %562 = vrot.lane.b32.xlu1 %v446_v41, %s4703_s20 }
 0x265   : > { %565 = vrot.lane.b32.xlu1 %v446_v41, %s4704_s11 }
 0x269   : > { %568 = vrot.lane.b32.xlu1 %v446_v41, %s4702_s6 }
 0x2cb   : > { %v715_v47 = vpop.permute.xlu0 %714  ;;  %v709_v48 = vpop.permute.xlu1 %708 }
 0x2cc   : > { %v733_v51 = vcombine.low %v709_v48, %v715_v47  ;;  %v734_v52 = vcombine.high %v709_v48, %v715_v47 }
 0x2ce   : > { %v741_v57 = vrot.slane %v733_v51, %v4958_v50  ;;  %v748_v58 = vrot.slane %v734_v52, %v4958_v50 }
 0x2cf   : > { %v712_v53 = vpop.permute.xlu1 %711 }
 0x2d0   : > { %v717_v54 = vcombine.low %v498_v37, %v712_v53  ;;  %v718_v55 = vcombine.high %v498_v37, %v712_v53 }
 0x2d2   : > { %v725_v59 = vrot.slane %v717_v54, %v4958_v50  ;;  %v732_v60 = vrot.slane %v718_v55, %v4958_v50 }
 0x2d3   : > { %v563_v61 = vpop.permute.xlu1 %562 }
 0x2d4   : > { %v749_v62 = vcombine.low %v725_v59, %v741_v57  ;;  %v750_v63 = vcombine.high %v725_v59, %v741_v57  ;;  %v765_v1 = vcombine.low %v732_v60, %v748_v58  ;;  %v766_v2 = vcombine.high %v732_v60, %v748_v58 }
 0x2d6   : > { %v757_v3 = vrot.slane %v749_v62, %v4961_v56  ;;  %v764_v4 = vrot.slane %v750_v63, %v4961_v56  ;;  %v773_v5 = vrot.slane %v765_v1, %v4961_v56  ;;  %v780_v6 = vrot.slane %v766_v2, %v4961_v56 }
 0x2d7   : > { %v566_v7 = vpop.permute.xlu1 %565 }
 0x2d8   : > { %v785_v8 = vcombine.low %v757_v3, %v764_v4  ;;  %v3972_v10 = vcombine.high %v757_v3, %v764_v4  ;;  %v801_v11 = vcombine.low %v773_v5, %v780_v6  ;;  %v3973_v12 = vcombine.high %v773_v5, %v780_v6 }
 0x2d9   : > { %v571_v22 = vcombine.low %v446_v41, %v566_v7  ;;  %v572_v23 = vcombine.high %v446_v41, %v566_v7 }
 0x2da   : > { %v792_v13 = vrot.slane %v785_v8, %v4958_v50  ;;  %v800_v14 = vrot.slane %v3972_v10, %v4958_v50  ;;  %v808_v20 = vrot.slane %v801_v11, %v4958_v50  ;;  %v816_v21 = vrot.slane %v3973_v12, %v4958_v50 }
 0x2db   : > { %v569_v24 = vpop.permute.xlu1 %568  ;;  %v579_v32 = vrot.slane %v571_v22, %v4958_v50  ;;  %v586_v33 = vrot.slane %v572_v23, %v4958_v50  ;;  %v358_v12 = vand.u32 127, %v355_v15 }
 0x2dc   : > { %v817_v25 = vcombine.low %v792_v13, %v800_v14  ;;  %v833_v26 = vcombine.low %v808_v20, %v816_v21  ;;  %v587_v27 = vcombine.low %v563_v61, %v569_v24  ;;  %v588_v28 = vcombine.high %v563_v61, %v569_v24 }
 0x2dd   : > { %v818_v57 = vcombine.high %v792_v13, %v800_v14  ;;  %v834_v58 = vcombine.high %v808_v20, %v816_v21  ;;  %vm359_vm3 = vcmp.ge.s32.totalorder %v4918_v16, %v358_v12  ;;  %v4707_v13 = vmov -1e+30  }
 0x2de   : > { %v825_v29 = vrot.slane %v817_v25, %v4961_v56  ;;  %v841_v31 = vrot.slane %v833_v26, %v4961_v56  ;;  %v595_v34 = vrot.slane %v587_v27, %v4958_v50  ;;  %v602_v35 = vrot.slane %v588_v28, %v4958_v50 }
 0x2df   : > { %v832_v2 = vrot.slane %v818_v57, %v4961_v56  ;;  %v848_v3 = vrot.slane %v834_v58, %v4961_v56  ;;  %v5017_v14 = vsel %vm359_vm3, 0.0, %v4707_v13 }
 0x2e0   : > { %v849_v36 = vcombine.low %v825_v29, %v841_v31  ;;  %v603_v37 = vcombine.low %v579_v32, %v595_v34  ;;  %v604_v38 = vcombine.high %v579_v32, %v595_v34  ;;  %v619_v39 = vcombine.low %v586_v33, %v602_v35 }
 0x2e1   : > { %v620_v40 = vcombine.high %v586_v33, %v602_v35  ;;  %v850_v1 = vcombine.high %v825_v29, %v841_v31  ;;  %v851_v7 = vcombine.low %v832_v2, %v848_v3  ;;  %v852_v10 = vcombine.high %v832_v2, %v848_v3 }
 0x2e2   : > { %4198 = vmatpush3.xpose.msk.msra.mxu1 %vm999_vm2, %v849_v36  ;;  %v611_v41 = vrot.slane %v603_v37, %v4961_v56  ;;  %v618_v42 = vrot.slane %v604_v38, %v4961_v56  ;;  %v627_v43 = vrot.slane %v619_v39, %v4961_v56 }
 0x2e3   : > { %v634_v44 = vrot.slane %v620_v40, %v4961_v56  ;;  %4202 = vmatprep.subr.mxu1 %v4700_v9 }
 0x2e4   : > { %v639_v45 = vcombine.low %v611_v41, %v618_v42  ;;  %v3970_v46 = vcombine.high %v611_v41, %v618_v42 }
 0x2e5   : > { %v655_v47 = vcombine.low %v627_v43, %v634_v44  ;;  %v3971_v48 = vcombine.high %v627_v43, %v634_v44 }
 0x2e6   : > { %v646_v49 = vrot.slane %v639_v45, %v4958_v50  ;;  %v654_v51 = vrot.slane %v3970_v46, %v4958_v50 }
 0x2e7   : > { %v662_v52 = vrot.slane %v655_v47, %v4958_v50  ;;  %v670_v53 = vrot.slane %v3971_v48, %v4958_v50 }
 0x2e8   : > { %v671_v54 = vcombine.low %v646_v49, %v654_v51  ;;  %v672_v61 = vcombine.high %v646_v49, %v654_v51 }
 0x2e9   : > { %v687_v55 = vcombine.low %v662_v52, %v670_v53  ;;  %v688_v62 = vcombine.high %v662_v52, %v670_v53 }
 0x2ea   : > { %v679_v59 = vrot.slane %v671_v54, %v4961_v56  ;;  %v686_v5 = vrot.slane %v672_v61, %v4961_v56 }
 0x2eb   : > { %v695_v60 = vrot.slane %v687_v55, %v4961_v56  ;;  %v702_v6 = vrot.slane %v688_v62, %v4961_v56 }
 0x2ed   : > { %v703_v63 = vcombine.low %v679_v59, %v695_v60  ;;  %v704_v4 = vcombine.high %v679_v59, %v695_v60  ;;  %v705_v8 = vcombine.low %v686_v5, %v702_v6  ;;  %v706_v11 = vcombine.high %v686_v5, %v702_v6 }
 0x2ef   : > { %4200 = vmatmul.mubr.msk.f32.vlgmr.msra.gmra.mxu1 %vm999_vm2, %v703_v63 }
 0x2f0   : > { %4203 = vmatpush3.xpose.msk.msra.mxu1 %vm999_vm2, %v850_v1  ;;  %4204 = vmatprep.mubr.msk.f32.mxu1 %vm4701_vm1, %v4700_v9 }
 0x2f1   : > { %4207 = vmatprep.subr.mxu1 %v4700_v9 }
 0x2f3   : > { %4205 = vmatmul.mubr.msk.f32.vlgmr.msra.gmra.mxu1 %vm999_vm2, %v704_v4 }
 0x2f4   : > { %4208 = vmatpush3.xpose.msk.msra.mxu1 %vm999_vm2, %v851_v7  ;;  %4209 = vmatprep.mubr.msk.f32.mxu1 %vm4701_vm1, %v4700_v9 }
 0x2f5   : > { %4212 = vmatprep.subr.mxu1 %v4700_v9 }
 0x2f7   : > { %4210 = vmatmul.mubr.msk.f32.vlgmr.msra.gmra.mxu1 %vm999_vm2, %v705_v8 }
 0x2f8   : > { %4213 = vmatpush3.xpose.msk.msra.mxu1 %vm999_vm2, %v852_v10  ;;  %4214 = vmatprep.mubr.msk.f32.mxu1 %vm4701_vm1, %v4700_v9 }
 0x2f9   : > { %4222 = vmatprep.subr.mxu1 %v4700_v9 }
 0x2fb   : > { %4215 = vmatmul.mubr.msk.f32.vlgmr.msra.gmra.mxu1 %vm999_vm2, %v706_v11 }
 0x2fc   : > { %4224 = vmatprep.mubr.msk.f32.mxu1 %vm4701_vm1, %v4700_v9 }
 0x3af   : > { %v1072_v20 = vpop.f32.mrf.mxu1 }
 0x3b0   : > { %v1073_v21 = vadd.f32 %v1072_v20, %v5017_v14 }
 0x3b1   : > { %v4201_v22 = vpop.f32.mrf.mxu1 }
 0x3b2   : > { %v1304_v23 = vsel %vm999_vm2, %v1073_v21, -inf }
 0x3b3   : > { %1305 = vmax.xlane.f32.xlu1 %v1304_v23  ;;  %v1148_v24 = vpop.f32.mrf.mxu1 }
 0x3b4   : > { %v1149_v25 = vadd.f32 %v1148_v24, %v5017_v14 }
 0x3b5   : > { %v4206_v26 = vpop.f32.mrf.mxu1 }
 0x3b6   : > { %v1307_v27 = vsel %vm999_vm2, %v1149_v25, -inf }
 0x3b7   : > { %1308 = vmax.xlane.f32.xlu0 %v1307_v27  ;;  %v1224_v15 = vpop.f32.mrf.mxu1 }
 0x3b8   : > { %v1225_v28 = vadd.f32 %v1224_v15, %v5017_v14 }
 0x3b9   : > { %v4211_v29 = vpop.f32.mrf.mxu1 }
 0x3ba   : > { %v1310_v31 = vsel %vm999_vm2, %v1225_v28, -inf }
 0x3bb   : > { %1311 = vmax.xlane.f32.xlu1 %v1310_v31  ;;  %v1300_v32 = vpop.f32.mrf.mxu1 }
 0x3bc   : > { %v1301_v33 = vadd.f32 %v1300_v32, %v5017_v14 }
 0x3bd   : > { %v4216_v34 = vpop.f32.mrf.mxu1 }
 0x3be   : > { %v1313_v35 = vsel %vm999_vm2, %v1301_v33, -inf }
 0x3bf   : > { %1314 = vmax.xlane.f32.xlu1 %v1313_v35 }
 0x43c   : > { %v1306_v36 = vpop.xlane.xlu1 %1305 }
 0x43d   : > { %v1316_v37 = vsub.f32 %v1073_v21, %v1306_v36 }
 0x43f   : > { %v1320_v38 = vmul.f32 1.442695, %v1316_v37 }
 0x440   : > { %v1309_v39 = vpop.xlane.xlu0 %1308 }
 0x441   : > { %4503 = vpow2.f32 %v1320_v38  ;;  %v1317_v40 = vsub.f32 %v1149_v25, %v1309_v39 }
 0x443   : > { %v1322_v41 = vmul.f32 1.442695, %v1317_v40 }
 0x444   : > { %v1312_v42 = vpop.xlane.xlu1 %1311 }
 0x445   : > { %4505 = vpow2.f32 %v1322_v41  ;;  %v1318_v43 = vsub.f32 %v1225_v28, %v1312_v42 }
 0x447   : > { %v1324_v44 = vmul.f32 1.442695, %v1318_v43 }
 0x448   : > { %v1315_v52 = vpop.xlane.xlu1 %1314 }
 0x449   : > { %4507 = vpow2.f32 %v1324_v44  ;;  %v1319_v53 = vsub.f32 %v1301_v33, %v1315_v52 }
 0x44b   : > { %v1326_v54 = vmul.f32 1.442695, %v1319_v53 }
 0x44d   : > { %4509 = vpow2.f32 %v1326_v54 }
 0x44e   : > { %v5027_v45 = vpop.eup %4503 }
 0x44f   : > { %v1328_v46 = vsel %vm999_vm2, %v5027_v45, 0.0 }
 0x450   : > { %1329 = vadd.xlane.f32.xlu0 %v1328_v46 }
 0x452   : > { %v5031_v47 = vpop.eup %4505 }
 0x453   : > { %v1331_v48 = vsel %vm999_vm2, %v5031_v47, 0.0 }
 0x454   : > { %1332 = vadd.xlane.f32.xlu1 %v1331_v48 }
 0x456   : > { %v5035_v49 = vpop.eup %4507 }
 0x457   : > { %v1334_v51 = vsel %vm999_vm2, %v5035_v49, 0.0 }
 0x458   : > { %1335 = vadd.xlane.f32.xlu0 %v1334_v51 }
 0x45a   : > { %v5043_v55 = vpop.eup %4509 }
 0x45b   : > { %v1337_v57 = vsel %vm999_vm2, %v5043_v55, 0.0 }
 0x465   : > { %857 = vrot.lane.b32.xlu1 %v4949_v30, %s4704_s11 }
 0x46e   : > { %854 = vrot.lane.b32.xlu0 %v4949_v30, %s4703_s20 }
 0x489   : > { %1338 = vadd.xlane.f32.xlu1 %v1337_v57 }
 0x49a   : > { %860 = vrot.lane.b32.xlu1 %v4949_v30, %s4702_s6 }
 0x4d9   : > { %v1330_v59 = vpop.xlane.xlu0 %1329 }
 0x4da   : > { %4511 = vrcp.f32 %v1330_v59 }
 0x4dd   : > { %v1333_v58 = vpop.xlane.xlu1 %1332 }
 0x4de   : > { %4513 = vrcp.f32 %v1333_v58 }
 0x4e1   : > { %v858_v60 = vpop.permute.xlu1 %857  ;;  %v1336_v61 = vpop.xlane.xlu0 %1335 }
 0x4e2   : > { %v863_v63 = vcombine.low %v4949_v30, %v858_v60  ;;  %v864_v1 = vcombine.high %v4949_v30, %v858_v60  ;;  %4515 = vrcp.f32 %v1336_v61 }
 0x4e4   : > { %v871_v6 = vrot.slane %v863_v63, %v4958_v50  ;;  %v878_v7 = vrot.slane %v864_v1, %v4958_v50 }
 0x4e5   : > { %v855_v2 = vpop.permute.xlu0 %854 }
 0x4e7   : > { %v4512_v36 = vpop.eup %4511 }
 0x4e8   : > { %v1344_v46 = vmul.f32 %v4512_v36, %v5027_v45 }
 0x4eb   : > { %v4514_v37 = vpop.eup %4513 }
 0x4ec   : > { %v1345_v48 = vmul.f32 %v4514_v37, %v5031_v47 }
 0x4ef   : > { %v4516_v42 = vpop.eup %4515 }
 0x4f0   : > { %v1346_v54 = vmul.f32 %v4516_v42, %v5035_v49 }
 0x512   : > { %v1339_v62 = vpop.xlane.xlu1 %1338 }
 0x513   : > { %4517 = vrcp.f32 %v1339_v62 }
 0x516   : > { %v861_v3 = vpop.permute.xlu1 %860 }
 0x517   : > { %v879_v4 = vcombine.low %v855_v2, %v861_v3  ;;  %v880_v5 = vcombine.high %v855_v2, %v861_v3 }
 0x519   : > { %v887_v8 = vrot.slane %v879_v4, %v4958_v50  ;;  %v894_v10 = vrot.slane %v880_v5, %v4958_v50 }
 0x51b   : > { %v895_v11 = vcombine.low %v871_v6, %v887_v8  ;;  %v896_v12 = vcombine.high %v871_v6, %v887_v8  ;;  %v911_v13 = vcombine.low %v878_v7, %v894_v10  ;;  %v912_v20 = vcombine.high %v878_v7, %v894_v10 }
 0x51d   : > { %v903_v30 = vrot.slane %v895_v11, %v4961_v56  ;;  %v910_v21 = vrot.slane %v896_v12, %v4961_v56  ;;  %v919_v22 = vrot.slane %v911_v13, %v4961_v56  ;;  %v926_v23 = vrot.slane %v912_v20, %v4961_v56  ;;  %v4469_v12 = vld [vmem:[%s5519_s2 + $0x8] sm:$0xff]  }
 0x51f   : > { %v931_v24 = vcombine.low %v903_v30, %v910_v21  ;;  %v3974_v25 = vcombine.high %v903_v30, %v910_v21  ;;  %v947_v26 = vcombine.low %v919_v22, %v926_v23  ;;  %v3975_v27 = vcombine.high %v919_v22, %v926_v23 }
 0x520   : > { %v4518_v51 = vpop.eup %4517 }
 0x521   : > { %v938_v15 = vrot.slane %v931_v24, %v4958_v50  ;;  %v946_v28 = vrot.slane %v3974_v25, %v4958_v50  ;;  %v954_v29 = vrot.slane %v947_v26, %v4958_v50  ;;  %v962_v31 = vrot.slane %v3975_v27, %v4958_v50  ;;  %v4470_v26 = vld [vmem:[%s5519_s2] sm:$0xff]  }
 0x522   : > { %v1347_v45 = vmul.f32 %v4518_v51, %v5043_v55 }
 0x523   : > { %v963_v32 = vcombine.low %v938_v15, %v946_v28  ;;  %v979_v33 = vcombine.low %v954_v29, %v962_v31  ;;  %v964_v34 = vcombine.high %v938_v15, %v946_v28  ;;  %v980_v35 = vcombine.high %v954_v29, %v962_v31 }
 0x525   : > { %v971_v38 = vrot.slane %v963_v32, %v4961_v56  ;;  %v987_v39 = vrot.slane %v979_v33, %v4961_v56  ;;  %v978_v40 = vrot.slane %v964_v34, %v4961_v56  ;;  %v994_v41 = vrot.slane %v980_v35, %v4961_v56 }
 0x527   : > { %v995_v43 = vcombine.low %v971_v38, %v987_v39  ;;  %v996_v44 = vcombine.high %v971_v38, %v987_v39  ;;  %v997_v52 = vcombine.low %v978_v40, %v994_v41  ;;  %v998_v53 = vcombine.high %v978_v40, %v994_v41 }
 0x529   : > { %4218 = vmatpush3.msra.mxu0 %v995_v43  ;;  %4223 = vmatpush3.msra.mxu1 %v996_v44 }
 0x52a   : > { %4220 = vmatmul.mubr.msk.f32.vlgmr.msra.gmra.mxu0 %vm999_vm2, %v1344_v46  ;;  %4225 = vmatmul.mubr.msk.f32.vlgmr.msra.gmra.mxu1 %vm999_vm2, %v1345_v48 }
 0x52b   : > { %4227 = vmatprep.subr.mxu0 %v4700_v9  ;;  %4232 = vmatprep.subr.mxu1 %v4700_v9 }
 0x52c   : > { %4228 = vmatpush3.msra.mxu0 %v997_v52  ;;  %4233 = vmatpush3.msra.mxu1 %v998_v53 }
 0x52d   : > { %4229 = vmatprep.mubr.msk.f32.mxu0 %vm4701_vm1, %v4700_v9  ;;  %4234 = vmatprep.mubr.msk.f32.mxu1 %vm4701_vm1, %v4700_v9 }
 0x52e   : > { %4230 = vmatmul.mubr.msk.f32.vlgmr.msra.gmra.mxu0 %vm999_vm2, %v1346_v54  ;;  %4235 = vmatmul.mubr.msk.f32.vlgmr.msra.gmra.mxu1 %vm999_vm2, %v1347_v45  ;;  %v1800_v54 = vsub.s32 4, %v4918_v16 }
 0x52f   : > { %4237 = vmatprep.subr.bf16.mxu0 %v4700_v9  ;;  %4241 = vmatprep.mubr.msk.bf16.mxu0 %vm4701_vm1, %v4700_v9 }
 0x530   : > { %4245 = vmatprep.subr.bf16.mxu1 %v4700_v9  ;;  %4249 = vmatprep.mubr.msk.bf16.mxu1 %vm4701_vm1, %v4700_v9  ;;  %v1801_v45 = vrot.slane %v4923_v18, %v1800_v54 }
 0x531   : > { %4238 = vmatpush3.bf16.msra.mxu0 %v4469_v12 }
 0x532   : > { %4239 = vmatprep.subr.bf16.mxu0 %v4700_v9 }
 0x535   : > { %4240 = vmatpush3.bf16.msra.mxu0 %v4470_v26 }
 0x536   : > { %4253 = vmatprep.subr.bf16.mxu0 %v4700_v9 }
 0x5ea   : > { %v1417_v47 = vpop.f32.mrf.mxu0  ;;  %v1490_v49 = vpop.f32.mrf.mxu1 }
 0x5ec   : > { %v4221_v55 = vpop.f32.mrf.mxu0  ;;  %v4226_v57 = vpop.f32.mrf.mxu1 }
 0x5ee   : > { %v1563_v58 = vpop.f32.mrf.mxu0  ;;  %v1636_v59 = vpop.f32.mrf.mxu1 }
 0x5ef   : > { %v1640_v60 = vcombine.low %v1417_v47, %v1563_v58  ;;  %v1641_v61 = vcombine.high %v1417_v47, %v1563_v58  ;;  %v1656_v62 = vcombine.low %v1490_v49, %v1636_v59  ;;  %v1657_v63 = vcombine.high %v1490_v49, %v1636_v59 }
 0x5f0   : > { %v4231_v1 = vpop.f32.mrf.mxu0  ;;  %v4236_v2 = vpop.f32.mrf.mxu1 }
 0x5f1   : > { %v1648_v3 = vrot.slane %v1640_v60, %v4958_v50  ;;  %v1655_v4 = vrot.slane %v1641_v61, %v4958_v50  ;;  %v1664_v5 = vrot.slane %v1656_v62, %v4958_v50  ;;  %v1671_v6 = vrot.slane %v1657_v63, %v4958_v50 }
 0x5f3   : > { %v1672_v7 = vcombine.low %v1648_v3, %v1664_v5  ;;  %v1673_v8 = vcombine.high %v1648_v3, %v1664_v5  ;;  %v1688_v10 = vcombine.low %v1655_v4, %v1671_v6  ;;  %v1689_v11 = vcombine.high %v1655_v4, %v1671_v6  ;;  %v4471_v3 = vld [vmem:[%s5520_s3 + $0x8] sm:$0xff]   ;;  %v4473_v4 = vld [vmem:[%s5521_s4 + $0x38] sm:$0xff]   ;;  %v4474_v5 = vld [vmem:[%s5521_s4 + $0x30] sm:$0xff]  }
 0x5f4   : > { %4246 = vmatpush3.bf16.msra.mxu1 %v4471_v3  ;;  %v4475_v6 = vld [vmem:[%s5521_s4 + $0x28] sm:$0xff]  }
 0x5f5   : > { %v1680_v13 = vrot.slane %v1672_v7, %v4961_v56  ;;  %v1687_v20 = vrot.slane %v1673_v8, %v4961_v56  ;;  %v1696_v30 = vrot.slane %v1688_v10, %v4961_v56  ;;  %v1703_v21 = vrot.slane %v1689_v11, %v4961_v56  ;;  %4247 = vmatprep.subr.bf16.mxu1 %v4700_v9  ;;  %v4476_v7 = vld [vmem:[%s5521_s4 + $0x20] sm:$0xff]   ;;  %v4477_v8 = vld [vmem:[%s5521_s4 + $0x18] sm:$0xff]   ;;  %v4478_v10 = vld [vmem:[%s5521_s4 + $0x10] sm:$0xff]  }
 0x5f7   : > { %v1708_v22 = vcombine.low %v1680_v13, %v1687_v20  ;;  %v3988_v23 = vcombine.high %v1680_v13, %v1687_v20  ;;  %v1724_v24 = vcombine.low %v1696_v30, %v1703_v21  ;;  %v3989_v25 = vcombine.high %v1696_v30, %v1703_v21 }
 0x5f8   : > { %v5164_v20 = vsub.s32 2, %v4918_v16  ;;  %v1878_v30 = vsub.s32 3, %v4918_v16 }
 0x5f9   : > { %v1715_v27 = vrot.slane %v1708_v22, %v4958_v50  ;;  %v1723_v15 = vrot.slane %v3988_v23, %v4958_v50  ;;  %v1731_v28 = vrot.slane %v1724_v24, %v4958_v50  ;;  %v1739_v29 = vrot.slane %v3989_v25, %v4958_v50 }
 0x5fa   : > { %v1874_v21 = vrot.slane %v4923_v18, %v5164_v20  ;;  %v1879_v24 = vrot.slane %v4923_v18, %v1878_v30 }
 0x5fb   : > { %v1741_v31 = vcombine.high %v1715_v27, %v1723_v15  ;;  %v1757_v32 = vcombine.high %v1731_v28, %v1739_v29  ;;  %v1740_v33 = vcombine.low %v1715_v27, %v1723_v15  ;;  %v1756_v34 = vcombine.low %v1731_v28, %v1739_v29  ;;  %v4479_v15 = vld [vmem:[%s5521_s4 + $0x8] sm:$0xff]   ;;  %v4480_v28 = vld [vmem:[%s5521_s4] sm:$0xff]  }
 0x5fc   : > { %v5186_v29 = vld [vmem:[%s5524_s7] sm:$0x7] }
 0x5fd   : > { %v1755_v35 = vrot.slane %v1741_v31, %v4961_v56  ;;  %v1771_v36 = vrot.slane %v1757_v32, %v4961_v56  ;;  %v1748_v37 = vrot.slane %v1740_v33, %v4961_v56  ;;  %v1764_v38 = vrot.slane %v1756_v34, %v4961_v56 }
 0x5fe   : > { %v1889_v31 = vrot.slane %v5186_v29, %v4921_v17 }
 0x5ff   : > { %v1774_v39 = vcombine.low %v1755_v35, %v1771_v36  ;;  %v1773_v40 = vcombine.high %v1748_v37, %v1764_v38  ;;  %v1772_v41 = vcombine.low %v1748_v37, %v1764_v38  ;;  %v1775_v42 = vcombine.high %v1755_v35, %v1771_v36 }
 0x601   : > { %1781 = vrot.lane.b32.xlu1 %v1774_v39, %s4708_s17  ;;  %1777 = vrot.lane.b32.xlu0 %v1773_v40, %s4709_s18  ;;  %v1965_v39 = vsub.s32 5, %v4918_v16 }
 0x603   : > { %v1966_v40 = vrot.slane %v4923_v18, %v1965_v39 }
 0x605   : > { %1785 = vrot.lane.b32.xlu0 %v1775_v42, %s4710_s23 }
 0x673   : > { %v1778_v43 = vpop.permute.xlu0 %1777  ;;  %v1782_v44 = vpop.permute.xlu1 %1781 }
 0x674   : > { %v1788_v46 = vsel %vm999_vm2, %v1772_v41, %v1778_v43 }
 0x675   : > { %v1790_v51 = vsel %vm1789_vm4, %v1788_v46, %v1782_v44 }
 0x677   : > { %v1786_v48 = vpop.permute.xlu0 %1785 }
 0x678   : > { %v1792_v52 = vsel %vm1791_vm5, %v1790_v51, %v1786_v48 }
 0x679   : > { %v1793_v53 = vpack.c.bf16 %v1792_v52, %v1792_v52 }
 0x67b   : > { %4242 = vmatmul.mubr.msk.bf16.vlgmr.msra.gmra.mxu0 %vm361_vm0, %v1793_v53 }
 0x67c   : > { %4269 = vmatprep.mubr.msk.bf16.mxu0 %vm4701_vm1, %v4700_v9  ;;  %4254 = vmatpush3.bf16.msra.mxu0 %v4473_v4 }
 0x67d   : > { %4255 = vmatprep.subr.bf16.mxu0 %v4700_v9 }
 0x680   : > { %4256 = vmatpush3.bf16.msra.mxu0 %v4474_v5  ;;  %v4483_v5 = vld [vmem:[%s5518_s1 + $0x48] sm:$0xff]  }
 0x681   : > { %4257 = vmatprep.subr.bf16.mxu0 %v4700_v9 }
 0x684   : > { %4258 = vmatpush3.bf16.msra.mxu0 %v4475_v6 }
 0x685   : > { %4259 = vmatprep.subr.bf16.mxu0 %v4700_v9 }
 0x688   : > { %4260 = vmatpush3.bf16.msra.mxu0 %v4476_v7  ;;  %v4484_v7 = vld [vmem:[%s5518_s1 + $0x40] sm:$0xff]  }
 0x689   : > { %4261 = vmatprep.subr.bf16.mxu0 %v4700_v9 }
 0x68c   : > { %4262 = vmatpush3.bf16.msra.mxu0 %v4477_v8  ;;  %v4486_v8 = vld [vmem:[%s5518_s1 + $0x50] sm:$0xff]  }
 0x68d   : > { %4263 = vmatprep.subr.bf16.mxu0 %v4700_v9 }
 0x690   : > { %4264 = vmatpush3.bf16.msra.mxu0 %v4478_v10 }
 0x691   : > { %4265 = vmatprep.subr.bf16.mxu0 %v4700_v9 }
 0x694   : > { %4266 = vmatpush3.bf16.msra.mxu0 %v4479_v15 }
 0x695   : > { %4267 = vmatprep.subr.bf16.mxu0 %v4700_v9 }
 0x698   : > { %4268 = vmatpush3.bf16.msra.mxu0 %v4480_v28 }
 0x699   : > { %4307 = vmatprep.subr.mxu0 %v4700_v9 }
 0x73b   : > { %v1851_v47 = vpop.f32.mrf.mxu0 }
 0x73c   : > { %v1852_v49 = vadd.f32 %v1851_v47, %v1801_v45 }
 0x73d   : > { %v4243_v55 = vpop.f32.mrf.mxu0 }
 0x73e   : > { %v5125_v57 = vadd.f32 %v1852_v49, %v4889_v0  ;;  %v4472_v0 = vld [vmem:[%s5520_s3] sm:$0xff]   ;;  %v4481_v55 = vld [vmem:[%s5518_s1 + $0x38] sm:$0xff]  }
 0x73f   : > { %v1854_v58 = vpop.f32.mrf.mxu0  ;;  %4248 = vmatpush3.bf16.msra.mxu1 %v4472_v0 }
 0x740   : > { %v1858_v59 = vsel %vm361_vm0, %v5125_v57, 0.0  ;;  %4273 = vmatprep.subr.bf16.mxu1 %v4700_v9 }
 0x741   : > { %1859 = vadd.xlane.f32.xlu1 %v1858_v59  ;;  %v4244_v60 = vpop.f32.mrf.mxu0 }
 0x7ca   : > { %v1860_v61 = vpop.xlane.xlu1 %1859 }
 0x7cb   : > { %v1861_v62 = vmul.f32 0.03125, %v1860_v61  ;;  %v2071_v61 = vsub.s32 6, %v4918_v16 }
 0x7cd   : > { %v1862_v63 = vsub.f32 %v5125_v57, %v1861_v62  ;;  %v2076_v62 = vsub.s32 7, %v4918_v16 }
 0x7cf   : > { %v1863_v1 = vmul.f32 %v1862_v63, %v1862_v63  ;;  %v2077_v3 = vrot.slane %v4923_v18, %v2076_v62 }
 0x7d1   : > { %v1864_v2 = vsel %vm361_vm0, %v1863_v1, 0.0 }
 0x7d2   : > { %1865 = vadd.xlane.f32.xlu0 %v1864_v2 }
 0x85b   : > { %v1866_v11 = vpop.xlane.xlu0 %1865 }
 0x85c   : > { %v1867_v12 = vmul.f32 0.03125, %v1866_v11 }
 0x85e   : > { %v1868_v13 = vadd.f32 1e-05, %v1867_v12 }
 0x860   : > { %4519 = vrsqrt.f32 %v1868_v13 }
 0x86d   : > { %v4520_v22 = vpop.eup %4519 }
 0x86e   : > { %v1870_v23 = vmul.f32 %v4520_v22, %v1862_v63  ;;  %v2072_v63 = vrot.slane %v4923_v18, %v2071_v61  ;;  %v4485_v18 = vld [vmem:[%s5518_s1 + $0x58] sm:$0xff]  }
 0x870   : > { %v1875_v25 = vmul.f32 %v1874_v21, %v1870_v23 }
 0x872   : > { %v1880_v26 = vadd.f32 %v1879_v24, %v1875_v25 }
 0x874   : > { %v1881_v27 = vpack.c.bf16 %v1880_v26, %v1880_v26 }
 0x876   : > { %4250 = vmatmul.mubr.msk.bf16.vlgmr.msra.gmra.mxu1 %vm361_vm0, %v1881_v27 }
 0x877   : > { %4277 = vmatprep.mubr.msk.bf16.mxu1 %vm4701_vm1, %v4700_v9  ;;  %4274 = vmatpush3.bf16.msra.mxu1 %v4481_v55 }
 0x878   : > { %4275 = vmatprep.subr.bf16.mxu1 %v4700_v9 }
 0x936   : > { %v1939_v32 = vpop.f32.mrf.mxu1 }
 0x937   : > { %v1940_v33 = vadd.f32 %v1939_v32, %v1889_v31 }
 0x938   : > { %v4251_v34 = vpop.f32.mrf.mxu1 }
 0x939   : > { %v1945_v35 = vmax.f32 %v1940_v33, 0.0 }
 0x93a   : > { %v1942_v36 = vpop.f32.mrf.mxu1 }
 0x93b   : > { %v1946_v37 = vpack.c.bf16 %v1945_v35, %v1945_v35 }
 0x93c   : > { %v4252_v38 = vpop.f32.mrf.mxu1 }
 0x93d   : > { %4270 = vmatmul.mubr.bf16.vlgmr.msra.gmra.mxu0 %v1946_v37 }
 0x93e   : > { %4309 = vmatprep.mubr.msk.f32.mxu0 %vm4701_vm1, %v4700_v9 }
 0x9fd   : > { %v2049_v41 = vpop.f32.mrf.mxu0 }
 0x9fe   : > { %v2050_v42 = vadd.f32 %v2049_v41, %v1966_v40 }
 0x9ff   : > { %v4271_v43 = vpop.f32.mrf.mxu0 }
 0xa00   : > { %v5197_v44 = vadd.f32 %v2050_v42, %v5125_v57  ;;  %v4482_v57 = vld [vmem:[%s5518_s1 + $0x30] sm:$0xff]  }
 0xa01   : > { %v2052_v46 = vpop.f32.mrf.mxu0  ;;  %4276 = vmatpush3.bf16.msra.mxu1 %v4482_v57 }
 0xa02   : > { %v2056_v48 = vsel %vm361_vm0, %v5197_v44, 0.0  ;;  %4281 = vmatprep.subr.bf16.mxu1 %v4700_v9 }
 0xa03   : > { %2057 = vadd.xlane.f32.xlu0 %v2056_v48  ;;  %v4272_v51 = vpop.f32.mrf.mxu0 }
 0xa8c   : > { %v2058_v52 = vpop.xlane.xlu0 %2057 }
 0xa8d   : > { %v2059_v53 = vmul.f32 0.03125, %v2058_v52 }
 0xa8f   : > { %v2060_v45 = vsub.f32 %v5197_v44, %v2059_v53 }
 0xa91   : > { %v2061_v47 = vmul.f32 %v2060_v45, %v2060_v45 }
 0xa93   : > { %v2062_v49 = vsel %vm361_vm0, %v2061_v47, 0.0 }
 0xa94   : > { %2063 = vadd.xlane.f32.xlu1 %v2062_v49 }
 0xb1d   : > { %v2064_v58 = vpop.xlane.xlu1 %2063 }
 0xb1e   : > { %v2065_v59 = vmul.f32 0.03125, %v2064_v58 }
 0xb20   : > { %v2066_v60 = vadd.f32 1e-05, %v2065_v59 }
 0xb22   : > { %4521 = vrsqrt.f32 %v2066_v60 }
 0xb2f   : > { %v4522_v1 = vpop.eup %4521 }
 0xb30   : > { %v2068_v2 = vmul.f32 %v4522_v1, %v2060_v45 }
 0xb32   : > { %v2073_v0 = vmul.f32 %v2072_v63, %v2068_v2 }
 0xb34   : > { %v2078_v4 = vadd.f32 %v2077_v3, %v2073_v0 }
 0xb36   : > { %v2079_v6 = vpack.c.bf16 %v2078_v4, %v2078_v4 }
 0xb38   : > { %4278 = vmatmul.mubr.msk.bf16.vlgmr.msra.gmra.mxu1 %vm361_vm0, %v2079_v6 }
 0xb39   : > { %4282 = vmatpush3.bf16.msra.mxu1 %v4483_v5  ;;  %4285 = vmatprep.mubr.msk.bf16.mxu1 %vm4701_vm1, %v4700_v9 }
 0xb3a   : > { %4283 = vmatprep.subr.bf16.mxu1 %v4700_v9 }
 0xb3d   : > { %4284 = vmatpush3.bf16.msra.mxu1 %v4484_v7 }
 0xb3e   : > { %4289 = vmatprep.subr.bf16.mxu1 %v4700_v9 }
 0xb40   : > { %4286 = vmatmul.mubr.msk.bf16.vlgmr.msra.gmra.mxu1 %vm361_vm0, %v2079_v6 }
 0xb41   : > { %4290 = vmatpush3.bf16.msra.mxu1 %v4485_v18  ;;  %4293 = vmatprep.mubr.msk.bf16.mxu1 %vm4701_vm1, %v4700_v9 }
 0xb42   : > { %4291 = vmatprep.subr.bf16.mxu1 %v4700_v9 }
 0xb45   : > { %4292 = vmatpush3.bf16.msra.mxu1 %v4486_v8 }
 0xb46   : > { %4297 = vmatprep.subr.mxu1 %v4700_v9 }
 0xb48   : > { %4294 = vmatmul.mubr.msk.bf16.vlgmr.msra.gmra.mxu1 %vm361_vm0, %v2079_v6 }
 0xb49   : > { %4299 = vmatprep.mubr.msk.f32.mxu1 %vm4701_vm1, %v4700_v9 }
 0xbf8   : > { %v2134_v10 = vpop.f32.mrf.mxu1 }
 0xbf9   : > { %v2140_v11 = vmul.f32 0.35355338, %v2134_v10 }
 0xbfa   : > { %v4279_v12 = vpop.f32.mrf.mxu1 }
 0xbfb   : > { %2256 = vrot.lane.b32.xlu0 %v2140_v11, %s4703_s20 }
 0xbfc   : > { %v2137_v13 = vpop.f32.mrf.mxu1 }
 0xbfe   : > { %v4280_v21 = vpop.f32.mrf.mxu1 }
 0xc00   : > { %v2192_v22 = vpop.f32.mrf.mxu1 }
 0xc01   : > { %2405 = vrot.lane.b32.xlu1 %v2192_v22, %s4704_s11  ;;  %2402 = vrot.lane.b32.xlu0 %v2192_v22, %s4703_s20 }
 0xc02   : > { %v4287_v23 = vpop.f32.mrf.mxu1 }
 0xc04   : > { %v2195_v24 = vpop.f32.mrf.mxu1 }
 0xc05   : > { %2408 = vrot.lane.b32.xlu1 %v2192_v22, %s4702_s6  ;;  %2262 = vrot.lane.b32.xlu0 %v2140_v11, %s4702_s6 }
 0xc06   : > { %v4288_v25 = vpop.f32.mrf.mxu1 }
 0xc08   : > { %v5245_v26 = vpop.f32.mrf.mxu1 }
 0xc09   : > { %2259 = vrot.lane.b32.xlu1 %v2140_v11, %s4704_s11 }
 0xc0a   : > { %v4295_v27 = vpop.f32.mrf.mxu1 }
 0xc0c   : > { %v2252_v15 = vpop.f32.mrf.mxu1 }
 0xc0e   : > { %v4296_v28 = vpop.f32.mrf.mxu1 }
 0xc6d   : > { %v2257_v31 = vpop.permute.xlu0 %2256 }
 0xc73   : > { %v2406_v32 = vpop.permute.xlu1 %2405  ;;  %v2403_v33 = vpop.permute.xlu0 %2402 }
 0xc74   : > { %v2411_v34 = vcombine.low %v2192_v22, %v2406_v32  ;;  %v2412_v35 = vcombine.high %v2192_v22, %v2406_v32 }
 0xc76   : > { %v2419_v41 = vrot.slane %v2411_v34, %v4958_v50  ;;  %v2426_v42 = vrot.slane %v2412_v35, %v4958_v50 }
 0xc77   : > { %v2409_v36 = vpop.permute.xlu1 %2408  ;;  %v2263_v40 = vpop.permute.xlu0 %2262 }
 0xc78   : > { %v2427_v37 = vcombine.low %v2403_v33, %v2409_v36  ;;  %v2428_v38 = vcombine.high %v2403_v33, %v2409_v36  ;;  %v2281_v48 = vcombine.low %v2257_v31, %v2263_v40  ;;  %v2282_v51 = vcombine.high %v2257_v31, %v2263_v40 }
 0xc7a   : > { %v2435_v43 = vrot.slane %v2427_v37, %v4958_v50  ;;  %v2442_v46 = vrot.slane %v2428_v38, %v4958_v50  ;;  %v2289_v62 = vrot.slane %v2281_v48, %v4958_v50  ;;  %v2296_v63 = vrot.slane %v2282_v51, %v4958_v50 }
 0xc7b   : > { %v2260_v52 = vpop.permute.xlu1 %2259 }
 0xc7c   : > { %v2443_v53 = vcombine.low %v2419_v41, %v2435_v43  ;;  %v2444_v45 = vcombine.high %v2419_v41, %v2435_v43  ;;  %v2459_v47 = vcombine.low %v2426_v42, %v2442_v46  ;;  %v2460_v49 = vcombine.high %v2426_v42, %v2442_v46 }
 0xc7d   : > { %v2265_v55 = vcombine.low %v2140_v11, %v2260_v52  ;;  %v2266_v57 = vcombine.high %v2140_v11, %v2260_v52 }
 0xc7e   : > { %v2451_v58 = vrot.slane %v2443_v53, %v4961_v56  ;;  %v2458_v59 = vrot.slane %v2444_v45, %v4961_v56  ;;  %v2467_v60 = vrot.slane %v2459_v47, %v4961_v56  ;;  %v2474_v61 = vrot.slane %v2460_v49, %v4961_v56 }
 0xc7f   : > { %v2273_v1 = vrot.slane %v2265_v55, %v4958_v50  ;;  %v2280_v2 = vrot.slane %v2266_v57, %v4958_v50 }
 0xc80   : > { %v2479_v3 = vcombine.low %v2451_v58, %v2458_v59  ;;  %v4027_v0 = vcombine.high %v2451_v58, %v2458_v59  ;;  %v2495_v4 = vcombine.low %v2467_v60, %v2474_v61  ;;  %v4028_v5 = vcombine.high %v2467_v60, %v2474_v61 }
 0xc81   : > { %v2297_v6 = vcombine.low %v2273_v1, %v2289_v62  ;;  %v2298_v7 = vcombine.high %v2273_v1, %v2289_v62  ;;  %v2313_v18 = vcombine.low %v2280_v2, %v2296_v63  ;;  %v2314_v8 = vcombine.high %v2280_v2, %v2296_v63 }
 0xc82   : > { %v2486_v10 = vrot.slane %v2479_v3, %v4958_v50  ;;  %v2494_v11 = vrot.slane %v4027_v0, %v4958_v50  ;;  %v2502_v12 = vrot.slane %v2495_v4, %v4958_v50  ;;  %v2510_v13 = vrot.slane %v4028_v5, %v4958_v50 }
 0xc83   : > { %v2305_v21 = vrot.slane %v2297_v6, %v4961_v56  ;;  %v2312_v22 = vrot.slane %v2298_v7, %v4961_v56  ;;  %v2321_v23 = vrot.slane %v2313_v18, %v4961_v56  ;;  %v2328_v24 = vrot.slane %v2314_v8, %v4961_v56 }
 0xc84   : > { %v2511_v25 = vcombine.low %v2486_v10, %v2494_v11  ;;  %v2512_v27 = vcombine.high %v2486_v10, %v2494_v11  ;;  %v2527_v15 = vcombine.low %v2502_v12, %v2510_v13  ;;  %v2528_v28 = vcombine.high %v2502_v12, %v2510_v13 }
 0xc85   : > { %v2333_v31 = vcombine.low %v2305_v21, %v2312_v22  ;;  %v4025_v32 = vcombine.high %v2305_v21, %v2312_v22  ;;  %v2349_v33 = vcombine.low %v2321_v23, %v2328_v24  ;;  %v4026_v34 = vcombine.high %v2321_v23, %v2328_v24 }
 0xc86   : > { %v2519_v35 = vrot.slane %v2511_v25, %v4961_v56  ;;  %v2535_v36 = vrot.slane %v2527_v15, %v4961_v56  ;;  %v2526_v37 = vrot.slane %v2512_v27, %v4961_v56  ;;  %v2542_v38 = vrot.slane %v2528_v28, %v4961_v56 }
 0xc87   : > { %v2340_v40 = vrot.slane %v2333_v31, %v4958_v50  ;;  %v2348_v41 = vrot.slane %v4025_v32, %v4958_v50  ;;  %v2356_v42 = vrot.slane %v2349_v33, %v4958_v50  ;;  %v2364_v43 = vrot.slane %v4026_v34, %v4958_v50 }
 0xc88   : > { %v2543_v46 = vcombine.low %v2519_v35, %v2535_v36  ;;  %v2545_v48 = vcombine.low %v2526_v37, %v2542_v38  ;;  %v2544_v60 = vcombine.high %v2519_v35, %v2535_v36  ;;  %v2546_v62 = vcombine.high %v2526_v37, %v2542_v38 }
 0xc89   : > { %v2365_v51 = vcombine.low %v2340_v40, %v2348_v41  ;;  %v2366_v52 = vcombine.high %v2340_v40, %v2348_v41  ;;  %v2381_v53 = vcombine.low %v2356_v42, %v2364_v43  ;;  %v2382_v45 = vcombine.high %v2356_v42, %v2364_v43 }
 0xc8a   : > { %4298 = vmatpush3.xpose.msk.msra.mxu1 %vm999_vm2, %v2543_v46  ;;  %4308 = vmatpush3.xpose.msk.msra.mxu0 %vm999_vm2, %v2545_v48 }
 0xc8b   : > { %4302 = vmatprep.subr.mxu1 %v4700_v9  ;;  %v2373_v47 = vrot.slane %v2365_v51, %v4961_v56  ;;  %v2389_v49 = vrot.slane %v2381_v53, %v4961_v56  ;;  %v2380_v55 = vrot.slane %v2366_v52, %v4961_v56  ;;  %v2396_v57 = vrot.slane %v2382_v45, %v4961_v56 }
 0xc8c   : > { %4317 = vmatprep.subr.mxu0 %v4700_v9 }
 0xc8d   : > { %v2397_v58 = vcombine.low %v2373_v47, %v2389_v49  ;;  %v2399_v59 = vcombine.low %v2380_v55, %v2396_v57  ;;  %v2398_v61 = vcombine.high %v2373_v47, %v2389_v49  ;;  %v2400_v63 = vcombine.high %v2380_v55, %v2396_v57 }
 0xc8f   : > { %4300 = vmatmul.mubr.msk.f32.vlgmr.msra.gmra.mxu1 %vm999_vm2, %v2397_v58  ;;  %4310 = vmatmul.mubr.msk.f32.vlgmr.msra.gmra.mxu0 %vm999_vm2, %v2399_v59 }
 0xc90   : > { %4303 = vmatpush3.xpose.msk.msra.mxu1 %vm999_vm2, %v2544_v60  ;;  %4304 = vmatprep.mubr.msk.f32.mxu1 %vm4701_vm1, %v4700_v9 }
 0xc91   : > { %4312 = vmatprep.subr.mxu1 %v4700_v9  ;;  %4319 = vmatprep.mubr.msk.f32.mxu0 %vm4701_vm1, %v4700_v9 }
 0xc93   : > { %4305 = vmatmul.mubr.msk.f32.vlgmr.msra.gmra.mxu1 %vm999_vm2, %v2398_v61 }
 0xc94   : > { %4313 = vmatpush3.xpose.msk.msra.mxu1 %vm999_vm2, %v2546_v62  ;;  %4314 = vmatprep.mubr.msk.f32.mxu1 %vm4701_vm1, %v4700_v9 }
 0xc95   : > { %4322 = vmatprep.subr.mxu1 %v4700_v9 }
 0xc97   : > { %4315 = vmatmul.mubr.msk.f32.vlgmr.msra.gmra.mxu1 %vm999_vm2, %v2400_v63 }
 0xc98   : > { %4324 = vmatprep.mubr.msk.f32.mxu1 %vm4701_vm1, %v4700_v9 }
 0xd4f   : > { %v2765_v1 = vpop.f32.mrf.mxu1  ;;  %v2917_v2 = vpop.f32.mrf.mxu0 }
 0xd50   : > { %v2766_v3 = vadd.f32 %v2765_v1, %v5017_v14  ;;  %v2918_v8 = vadd.f32 %v2917_v2, %v5017_v14 }
 0xd51   : > { %v4301_v0 = vpop.f32.mrf.mxu1  ;;  %v4311_v4 = vpop.f32.mrf.mxu0 }
 0xd52   : > { %v2997_v5 = vsel %vm999_vm2, %v2766_v3, -inf  ;;  %v3003_v21 = vsel %vm999_vm2, %v2918_v8, -inf }
 0xd53   : > { %2998 = vmax.xlane.f32.xlu1 %v2997_v5  ;;  %v2841_v6 = vpop.f32.mrf.mxu1 }
 0xd54   : > { %v2842_v7 = vadd.f32 %v2841_v6, %v5017_v14 }
 0xd55   : > { %v4306_v18 = vpop.f32.mrf.mxu1 }
 0xd56   : > { %v3000_v10 = vsel %vm999_vm2, %v2842_v7, -inf }
 0xd57   : > { %3001 = vmax.xlane.f32.xlu0 %v3000_v10  ;;  %v2993_v11 = vpop.f32.mrf.mxu1 }
 0xd58   : > { %v2994_v12 = vadd.f32 %v2993_v11, %v5017_v14 }
 0xd59   : > { %v4316_v13 = vpop.f32.mrf.mxu1 }
 0xd5a   : > { %v3006_v22 = vsel %vm999_vm2, %v2994_v12, -inf }
 0xd5b   : > { %3004 = vmax.xlane.f32.xlu0 %v3003_v21  ;;  %3007 = vmax.xlane.f32.xlu1 %v3006_v22 }
 0xd6c   : > { %2551 = vrot.lane.b32.xlu1 %v5245_v26, %s4704_s11  ;;  %s3839_s11 = scalar_lea.sflag [#allocation4], %s4875_s5 }
 0xddc   : > { %v2999_v23 = vpop.xlane.xlu1 %2998 }
 0xddd   : > { %v3009_v24 = vsub.f32 %v2766_v3, %v2999_v23 }
 0xddf   : > { %v3013_v25 = vmul.f32 1.442695, %v3009_v24 }
 0xde0   : > { %v3002_v27 = vpop.xlane.xlu0 %3001 }
 0xde1   : > { %4523 = vpow2.f32 %v3013_v25  ;;  %v3010_v15 = vsub.f32 %v2842_v7, %v3002_v27 }
 0xde3   : > { %v3015_v28 = vmul.f32 1.442695, %v3010_v15 }
 0xde4   : > { %v3005_v31 = vpop.xlane.xlu0 %3004  ;;  %v3008_v32 = vpop.xlane.xlu1 %3007 }
 0xde5   : > { %4525 = vpow2.f32 %v3015_v28  ;;  %v3011_v14 = vsub.f32 %v2918_v8, %v3005_v31  ;;  %v3012_v33 = vsub.f32 %v2994_v12, %v3008_v32 }
 0xde7   : > { %v3017_v34 = vmul.f32 1.442695, %v3011_v14  ;;  %v3019_v35 = vmul.f32 1.442695, %v3012_v33 }
 0xde8   : > { %v2552_v48 = vpop.permute.xlu1 %2551 }
 0xde9   : > { %4527 = vpow2.f32 %v3017_v34  ;;  %v2557_v47 = vcombine.low %v5245_v26, %v2552_v48  ;;  %v2558_v49 = vcombine.high %v5245_v26, %v2552_v48 }
 0xdea   : > { %4529 = vpow2.f32 %v3019_v35 }
 0xdeb   : > { %v2565_v60 = vrot.slane %v2557_v47, %v4958_v50  ;;  %v2572_v61 = vrot.slane %v2558_v49, %v4958_v50 }
 0xdee   : > { %v4524_v36 = vpop.eup %4523 }
 0xdef   : > { %v3021_v37 = vsel %vm999_vm2, %v4524_v36, 0.0 }
 0xdf0   : > { %3022 = vadd.xlane.f32.xlu0 %v3021_v37 }
 0xdf2   : > { %v4526_v38 = vpop.eup %4525 }
 0xdf3   : > { %v3024_v40 = vsel %vm999_vm2, %v4526_v38, 0.0 }
 0xdf4   : > { %3025 = vadd.xlane.f32.xlu1 %v3024_v40 }
 0xdf6   : > { %v5312_v41 = vpop.eup %4527 }
 0xdf7   : > { %v5314_v42 = vpop.eup %4529  ;;  %v3027_v43 = vsel %vm999_vm2, %v5312_v41, 0.0 }
 0xdf8   : > { %3028 = vadd.xlane.f32.xlu0 %v3027_v43  ;;  %v3030_v46 = vsel %vm999_vm2, %v5314_v42, 0.0 }
 0xdf9   : > { %3031 = vadd.xlane.f32.xlu1 %v3030_v46 }
 0xe0a   : > { %2554 = vrot.lane.b32.xlu1 %v5245_v26, %s4702_s6 }
 0xe0e   : > { %2548 = vrot.lane.b32.xlu0 %v5245_v26, %s4703_s20  ;;  %s5474_s20 = scalar_lea.hbm %s5525_s8, %s4087_s10 }
 0xe79   : > { %v3023_v51 = vpop.xlane.xlu0 %3022 }
 0xe7a   : > { %4531 = vrcp.f32 %v3023_v51 }
 0xe7d   : > { %v3026_v52 = vpop.xlane.xlu1 %3025 }
 0xe7e   : > { %4533 = vrcp.f32 %v3026_v52 }
 0xe81   : > { %v3029_v53 = vpop.xlane.xlu0 %3028 }
 0xe82   : > { %v3032_v45 = vpop.xlane.xlu1 %3031  ;;  %4535 = vrcp.f32 %v3029_v53 }
 0xe83   : > { %4537 = vrcp.f32 %v3032_v45 }
 0xe85   : > { %v2549_v55 = vpop.permute.xlu0 %2548 }
 0xe86   : > { %v2555_v57 = vpop.permute.xlu1 %2554 }
 0xe87   : > { %v2573_v58 = vcombine.low %v2549_v55, %v2555_v57  ;;  %v2574_v59 = vcombine.high %v2549_v55, %v2555_v57  ;;  %v4532_v27 = vpop.eup %4531 }
 0xe88   : > { %v3037_v37 = vmul.f32 %v4532_v27, %v4524_v36 }
 0xe89   : > { %v2581_v62 = vrot.slane %v2573_v58, %v4958_v50  ;;  %v2588_v63 = vrot.slane %v2574_v59, %v4958_v50 }
 0xe8b   : > { %v2589_v1 = vcombine.low %v2565_v60, %v2581_v62  ;;  %v2590_v2 = vcombine.high %v2565_v60, %v2581_v62  ;;  %v2605_v3 = vcombine.low %v2572_v61, %v2588_v63  ;;  %v2606_v0 = vcombine.high %v2572_v61, %v2588_v63  ;;  %v4534_v15 = vpop.eup %4533 }
 0xe8c   : > { %v3038_v40 = vmul.f32 %v4534_v15, %v4526_v38 }
 0xe8d   : > { %v2597_v26 = vrot.slane %v2589_v1, %v4961_v56  ;;  %v2604_v4 = vrot.slane %v2590_v2, %v4961_v56  ;;  %v2613_v5 = vrot.slane %v2605_v3, %v4961_v56  ;;  %v2620_v6 = vrot.slane %v2606_v0, %v4961_v56 }
 0xe8f   : > { %v2625_v7 = vcombine.low %v2597_v26, %v2604_v4  ;;  %v4029_v18 = vcombine.high %v2597_v26, %v2604_v4  ;;  %v2641_v8 = vcombine.low %v2613_v5, %v2620_v6  ;;  %v4030_v10 = vcombine.high %v2613_v5, %v2620_v6  ;;  %v4536_v33 = vpop.eup %4535  ;;  %v4487_v26 = vld [vmem:[%s5519_s2 + $0x18] sm:$0xff]  }
 0xe90   : > { %v4538_v43 = vpop.eup %4537  ;;  %v3039_v51 = vmul.f32 %v4536_v33, %v5312_v41 }
 0xe91   : > { %v2632_v11 = vrot.slane %v2625_v7, %v4958_v50  ;;  %v2640_v12 = vrot.slane %v4029_v18, %v4958_v50  ;;  %v2648_v13 = vrot.slane %v2641_v8, %v4958_v50  ;;  %v2656_v21 = vrot.slane %v4030_v10, %v4958_v50 }
 0xe92   : > { %v3040_v36 = vmul.f32 %v4538_v43, %v5314_v42 }
 0xe93   : > { %v2657_v22 = vcombine.low %v2632_v11, %v2640_v12  ;;  %v2673_v23 = vcombine.low %v2648_v13, %v2656_v21  ;;  %v2658_v24 = vcombine.high %v2632_v11, %v2640_v12  ;;  %v2674_v25 = vcombine.high %v2648_v13, %v2656_v21  ;;  %v4488_v12 = vld [vmem:[%s5519_s2 + $0x10] sm:$0xff]  }
 0xe95   : > { %v2665_v28 = vrot.slane %v2657_v22, %v4961_v56  ;;  %v2681_v31 = vrot.slane %v2673_v23, %v4961_v56  ;;  %v2672_v32 = vrot.slane %v2658_v24, %v4961_v56  ;;  %v2688_v14 = vrot.slane %v2674_v25, %v4961_v56 }
 0xe97   : > { %v2689_v34 = vcombine.low %v2665_v28, %v2681_v31  ;;  %v2690_v35 = vcombine.high %v2665_v28, %v2681_v31  ;;  %v2691_v46 = vcombine.low %v2672_v32, %v2688_v14  ;;  %v2692_v48 = vcombine.high %v2672_v32, %v2688_v14 }
 0xe99   : > { %4318 = vmatpush3.msra.mxu0 %v2689_v34  ;;  %4323 = vmatpush3.msra.mxu1 %v2690_v35 }
 0xe9a   : > { %4320 = vmatmul.mubr.msk.f32.vlgmr.msra.gmra.mxu0 %vm999_vm2, %v3037_v37  ;;  %4325 = vmatmul.mubr.msk.f32.vlgmr.msra.gmra.mxu1 %vm999_vm2, %v3038_v40 }
 0xe9b   : > { %4327 = vmatprep.subr.mxu0 %v4700_v9  ;;  %4332 = vmatprep.subr.mxu1 %v4700_v9 }
 0xe9c   : > { %4328 = vmatpush3.msra.mxu0 %v2691_v46  ;;  %4333 = vmatpush3.msra.mxu1 %v2692_v48 }
 0xe9d   : > { %4329 = vmatprep.mubr.msk.f32.mxu0 %vm4701_vm1, %v4700_v9  ;;  %4334 = vmatprep.mubr.msk.f32.mxu1 %vm4701_vm1, %v4700_v9 }
 0xe9e   : > { %4330 = vmatmul.mubr.msk.f32.vlgmr.msra.gmra.mxu0 %vm999_vm2, %v3039_v51  ;;  %4335 = vmatmul.mubr.msk.f32.vlgmr.msra.gmra.mxu1 %vm999_vm2, %v3040_v36  ;;  %v5393_v36 = vld [vmem:[#allocation7 + $0x8] sm:$0x3f] }
 0xe9f   : > { %4337 = vmatprep.subr.bf16.mxu0 %v4700_v9  ;;  %4341 = vmatprep.mubr.msk.bf16.mxu0 %vm4701_vm1, %v4700_v9 }
 0xea0   : > { %4345 = vmatprep.subr.bf16.mxu1 %v4700_v9  ;;  %4349 = vmatprep.mubr.msk.bf16.mxu1 %vm4701_vm1, %v4700_v9 }
 0xea1   : > { %4338 = vmatpush3.bf16.msra.mxu0 %v4487_v26 }
 0xea2   : > { %4339 = vmatprep.subr.bf16.mxu0 %v4700_v9 }
 0xea5   : > { %4340 = vmatpush3.bf16.msra.mxu0 %v4488_v12 }
 0xea6   : > { %4353 = vmatprep.subr.bf16.mxu0 %v4700_v9 }
 0xf5a   : > { %v3110_v38 = vpop.f32.mrf.mxu0  ;;  %v3183_v41 = vpop.f32.mrf.mxu1 }
 0xf5c   : > { %v4321_v42 = vpop.f32.mrf.mxu0  ;;  %v4326_v52 = vpop.f32.mrf.mxu1 }
 0xf5e   : > { %v3256_v53 = vpop.f32.mrf.mxu0  ;;  %v3329_v45 = vpop.f32.mrf.mxu1 }
 0xf5f   : > { %v3333_v47 = vcombine.low %v3110_v38, %v3256_v53  ;;  %v3334_v49 = vcombine.high %v3110_v38, %v3256_v53  ;;  %v3349_v55 = vcombine.low %v3183_v41, %v3329_v45  ;;  %v3350_v57 = vcombine.high %v3183_v41, %v3329_v45 }
 0xf60   : > { %v4331_v58 = vpop.f32.mrf.mxu0  ;;  %v4336_v59 = vpop.f32.mrf.mxu1  ;;  %v3493_v38 = vrot.slane %v5393_v36, %v5164_v20 }
 0xf61   : > { %v3341_v60 = vrot.slane %v3333_v47, %v4958_v50  ;;  %v3348_v61 = vrot.slane %v3334_v49, %v4958_v50  ;;  %v3357_v62 = vrot.slane %v3349_v55, %v4958_v50  ;;  %v3364_v63 = vrot.slane %v3350_v57, %v4958_v50 }
 0xf63   : > { %v3365_v1 = vcombine.low %v3341_v60, %v3357_v62  ;;  %v3366_v2 = vcombine.high %v3341_v60, %v3357_v62  ;;  %v3381_v3 = vcombine.low %v3348_v61, %v3364_v63  ;;  %v3382_v0 = vcombine.high %v3348_v61, %v3364_v63  ;;  %v4489_v61 = vld [vmem:[%s5520_s3 + $0x18] sm:$0xff]   ;;  %v4492_v63 = vld [vmem:[%s5521_s4 + $0x70] sm:$0xff]  }
 0xf64   : > { %4346 = vmatpush3.bf16.msra.mxu1 %v4489_v61  ;;  %v4491_v62 = vld [vmem:[%s5521_s4 + $0x78] sm:$0xff]  }
 0xf65   : > { %v3373_v4 = vrot.slane %v3365_v1, %v4961_v56  ;;  %v3380_v5 = vrot.slane %v3366_v2, %v4961_v56  ;;  %v3389_v6 = vrot.slane %v3381_v3, %v4961_v56  ;;  %v3396_v7 = vrot.slane %v3382_v0, %v4961_v56  ;;  %4347 = vmatprep.subr.bf16.mxu1 %v4700_v9  ;;  %v4493_v1 = vld [vmem:[%s5521_s4 + $0x68] sm:$0xff]   ;;  %v4494_v2 = vld [vmem:[%s5521_s4 + $0x60] sm:$0xff]   ;;  %v4495_v3 = vld [vmem:[%s5521_s4 + $0x58] sm:$0xff]  }
 0xf66   : > { %v4496_v0 = vld [vmem:[%s5521_s4 + $0x50] sm:$0xff]  }
 0xf67   : > { %v3401_v18 = vcombine.low %v3373_v4, %v3380_v5  ;;  %v4043_v8 = vcombine.high %v3373_v4, %v3380_v5  ;;  %v3417_v10 = vcombine.low %v3389_v6, %v3396_v7  ;;  %v4044_v11 = vcombine.high %v3389_v6, %v3396_v7 }
 0xf68   : > { %v3566_v6 = vrot.slane %v5393_v36, %v4921_v17  ;;  %v4498_v17 = vld [vmem:[%s5521_s4 + $0x40] sm:$0xff]  }
 0xf69   : > { %v3408_v13 = vrot.slane %v3401_v18, %v4958_v50  ;;  %v3416_v21 = vrot.slane %v4043_v8, %v4958_v50  ;;  %v3424_v22 = vrot.slane %v3417_v10, %v4958_v50  ;;  %v3432_v23 = vrot.slane %v4044_v11, %v4958_v50 }
 0xf6a   : > { %v3571_v8 = vrot.slane %v5393_v36, %v4926_v19 }
 0xf6b   : > { %v3434_v24 = vcombine.high %v3408_v13, %v3416_v21  ;;  %v3450_v25 = vcombine.high %v3424_v22, %v3432_v23  ;;  %v3433_v27 = vcombine.low %v3408_v13, %v3416_v21  ;;  %v3449_v15 = vcombine.low %v3424_v22, %v3432_v23  ;;  %v4497_v13 = vld [vmem:[%s5521_s4 + $0x48] sm:$0xff]  }
 0xf6c   : > { %v3582_v21 = vrot.slane %v5186_v29, %v4926_v19 }
 0xf6d   : > { %v3448_v28 = vrot.slane %v3434_v24, %v4961_v56  ;;  %v3464_v31 = vrot.slane %v3450_v25, %v4961_v56  ;;  %v3441_v32 = vrot.slane %v3433_v27, %v4961_v56  ;;  %v3457_v14 = vrot.slane %v3449_v15, %v4961_v56 }
 0xf6f   : > { %v3467_v33 = vcombine.low %v3448_v28, %v3464_v31  ;;  %v3466_v34 = vcombine.high %v3441_v32, %v3457_v14  ;;  %v3465_v35 = vcombine.low %v3441_v32, %v3457_v14  ;;  %v3468_v50 = vcombine.high %v3448_v28, %v3464_v31 }
 0xf70   : > { %v3660_v31 = vrot.slane %v5393_v36, %v1878_v30  ;;  %v4500_v30 = vld [vmem:[#allocation5] sm:$0xff]  }
 0xf71   : > { %3474 = vrot.lane.b32.xlu1 %v3467_v33, %s4708_s17  ;;  %3470 = vrot.lane.b32.xlu0 %v3466_v34, %s4709_s18  ;;  %s4629_s17 = scalar_lea.vmem %s4628_s26, 256 }
 0xf72   : > { %p4631_p12 = scmp.lt.s32.totalorder %s4629_s17, %s4623_s9 }
 0xf74   : > { %p4632_p3 = por %p4631_p12, %p4630_p6 }
 0xf75   : > { %3478 = vrot.lane.b32.xlu0 %v3468_v50, %s4710_s23 }
 0xf76   : > { %p4633_p9 = pnand %p4632_p3, %p4626_p2 }
 0xfe3   : > { %v3471_v37 = vpop.permute.xlu0 %3470  ;;  %v3475_v40 = vpop.permute.xlu1 %3474 }
 0xfe4   : > { %v3481_v43 = vsel %vm999_vm2, %v3465_v35, %v3471_v37 }
 0xfe5   : > { %v3482_v48 = vsel %vm1789_vm4, %v3481_v43, %v3475_v40 }
 0xfe7   : > { %v3479_v46 = vpop.permute.xlu0 %3478 }
 0xfe8   : > { %v3483_v51 = vsel %vm1791_vm5, %v3482_v48, %v3479_v46 }
 0xfe9   : > { %v3484_v56 = vpack.c.bf16 %v3483_v51, %v3483_v51  ;;  %v4499_v51 = vld [vmem:[#allocation5 + $0x8] sm:$0xff]  }
 0xfeb   : > { %4342 = vmatmul.mubr.msk.bf16.vlgmr.msra.gmra.mxu0 %vm361_vm0, %v3484_v56 }
 0xfec   : > { %4369 = vmatprep.mubr.msk.bf16.mxu0 %vm4701_vm1, %v4700_v9  ;;  %4354 = vmatpush3.bf16.msra.mxu0 %v4491_v62 }
 0xfed   : > { %4355 = vmatprep.subr.bf16.mxu0 %v4700_v9 }
 0xff0   : > { %4356 = vmatpush3.bf16.msra.mxu0 %v4492_v63 }
 0xff1   : > { %4357 = vmatprep.subr.bf16.mxu0 %v4700_v9 }
 0xff4   : > { %4358 = vmatpush3.bf16.msra.mxu0 %v4493_v1 }
 0xff5   : > { %4359 = vmatprep.subr.bf16.mxu0 %v4700_v9 }
 0xff8   : > { %4360 = vmatpush3.bf16.msra.mxu0 %v4494_v2 }
 0xff9   : > { %4361 = vmatprep.subr.bf16.mxu0 %v4700_v9 }
 0xffc   : > { %4362 = vmatpush3.bf16.msra.mxu0 %v4495_v3 }
 0xffd   : > { %4363 = vmatprep.subr.bf16.mxu0 %v4700_v9 }
0x1000   : > { %4364 = vmatpush3.bf16.msra.mxu0 %v4496_v0 }
0x1001   : > { %4365 = vmatprep.subr.bf16.mxu0 %v4700_v9 }
0x1004   : > { %4366 = vmatpush3.bf16.msra.mxu0 %v4497_v13 }
0x1005   : > { %4367 = vmatprep.subr.bf16.mxu0 %v4700_v9 }
0x1008   : > { %4368 = vmatpush3.bf16.msra.mxu0 %v4498_v17 }
0x10ab   : > { %v3543_v41 = vpop.f32.mrf.mxu0 }
0x10ac   : > { %v3544_v42 = vadd.f32 %v3543_v41, %v3493_v38 }
0x10ad   : > { %v4343_v52 = vpop.f32.mrf.mxu0 }
0x10ae   : > { %v5398_v53 = vadd.f32 %v3544_v42, %v5197_v44  ;;  %v4490_v44 = vld [vmem:[%s5520_s3 + $0x10] sm:$0xff]   ;;  %v3766_v42 = vrot.slane %v5393_v36, %v1800_v54 }
0x10af   : > { %v3546_v45 = vpop.f32.mrf.mxu0  ;;  %4348 = vmatpush3.bf16.msra.mxu1 %v4490_v44 }
0x10b0   : > { %v3550_v47 = vsel %vm361_vm0, %v5398_v53, 0.0  ;;  %4373 = vmatprep.subr.bf16.mxu1 %v4700_v9 }
0x10b1   : > { %3551 = vadd.xlane.f32.xlu1 %v3550_v47  ;;  %v4344_v49 = vpop.f32.mrf.mxu0 }
0x113a   : > { %v3552_v55 = vpop.xlane.xlu1 %3551 }
0x113b   : > { %v3553_v57 = vmul.f32 0.03125, %v3552_v55  ;;  %v3781_v55 = vrot.slane %v5186_v29, %v5164_v20 }
0x113d   : > { %v3554_v58 = vsub.f32 %v5398_v53, %v3553_v57 }
0x113f   : > { %v3555_v59 = vmul.f32 %v3554_v58, %v3554_v58 }
0x1141   : > { %v3556_v60 = vsel %vm361_vm0, %v3555_v59, 0.0 }
0x1142   : > { %3557 = vadd.xlane.f32.xlu0 %v3556_v60 }
0x11cb   : > { %v3558_v26 = vpop.xlane.xlu0 %3557 }
0x11cc   : > { %v3559_v4 = vmul.f32 0.03125, %v3558_v26 }
0x11ce   : > { %v3560_v5 = vadd.f32 1e-05, %v3559_v4 }
0x11d0   : > { %4539 = vrsqrt.f32 %v3560_v5 }
0x11dd   : > { %v4540_v7 = vpop.eup %4539 }
0x11de   : > { %v3562_v18 = vmul.f32 %v4540_v7, %v3554_v58 }
0x11e0   : > { %v3567_v10 = vmul.f32 %v3566_v6, %v3562_v18 }
0x11e2   : > { %v3572_v11 = vadd.f32 %v3571_v8, %v3567_v10 }
0x11e4   : > { %v3573_v12 = vpack.c.bf16 %v3572_v11, %v3572_v11 }
0x11e6   : > { %4350 = vmatmul.mubr.msk.bf16.vlgmr.msra.gmra.mxu1 %vm361_vm0, %v3573_v12 }
0x11e7   : > { %4377 = vmatprep.mubr.msk.bf16.mxu1 %vm4701_vm1, %v4700_v9  ;;  %4374 = vmatpush3.bf16.msra.mxu1 %v4499_v51 }
0x11e8   : > { %4375 = vmatprep.subr.bf16.mxu1 %v4700_v9 }
0x11eb   : > { %4376 = vmatpush3.bf16.msra.mxu1 %v4500_v30 }
0x12a6   : > { %v3632_v22 = vpop.f32.mrf.mxu1 }
0x12a7   : > { %v3633_v23 = vadd.f32 %v3632_v22, %v3582_v21 }
0x12a8   : > { %v4351_v24 = vpop.f32.mrf.mxu1 }
0x12a9   : > { %v3638_v25 = vmax.f32 %v3633_v23, 0.0 }
0x12aa   : > { %v3635_v27 = vpop.f32.mrf.mxu1 }
0x12ab   : > { %v3639_v15 = vpack.c.bf16 %v3638_v25, %v3638_v25 }
0x12ac   : > { %v4352_v28 = vpop.f32.mrf.mxu1 }
0x12ad   : > { %4370 = vmatmul.mubr.bf16.vlgmr.msra.gmra.mxu0 %v3639_v15 }
0x136d   : > { %v3743_v32 = vpop.f32.mrf.mxu0 }
0x136e   : > { %v3744_v14 = vadd.f32 %v3743_v32, %v3660_v31 }
0x136f   : > { %v4371_v33 = vpop.f32.mrf.mxu0 }
0x1370   : > { %v3749_v34 = vadd.f32 %v3744_v14, %v5398_v53  ;;  %v3771_v53 = vrot.slane %v5393_v36, %v1965_v39 }
0x1371   : > { %v3746_v35 = vpop.f32.mrf.mxu0 }
0x1372   : > { %v3750_v19 = vsel %vm361_vm0, %v3749_v34, 0.0 }
0x1373   : > { %3751 = vadd.xlane.f32.xlu0 %v3750_v19  ;;  %v4372_v50 = vpop.f32.mrf.mxu0 }
0x13fc   : > { %v3752_v37 = vpop.xlane.xlu0 %3751 }
0x13fd   : > { %v3753_v40 = vmul.f32 0.03125, %v3752_v37 }
0x13ff   : > { %v3754_v43 = vsub.f32 %v3749_v34, %v3753_v40 }
0x1401   : > { %v3755_v46 = vmul.f32 %v3754_v43, %v3754_v43 }
0x1403   : > { %v3756_v48 = vsel %vm361_vm0, %v3755_v46, 0.0 }
0x1404   : > { %3757 = vadd.xlane.f32.xlu1 %v3756_v48 }
0x148d   : > { %v3758_v56 = vpop.xlane.xlu1 %3757 }
0x148e   : > { %v3759_v38 = vmul.f32 0.03125, %v3758_v56 }
0x1490   : > { %v3760_v41 = vadd.f32 1e-05, %v3759_v38 }
0x1492   : > { %4541 = vrsqrt.f32 %v3760_v41 }
0x149f   : > { %v4542_v52 = vpop.eup %4541 }
0x14a0   : > { %v3762_v45 = vmul.f32 %v4542_v52, %v3754_v43 }
0x14a2   : > { %v3767_v47 = vmul.f32 %v3766_v42, %v3762_v45 }
0x14a4   : > { %v3772_v49 = vadd.f32 %v3771_v53, %v3767_v47 }
0x14a6   : > { %v3773_v9 = vpack.c.bf16 %v3772_v49, %v3772_v49 }
0x14a8   : > { %4378 = vmatmul.mubr.msk.bf16.vlgmr.msra.gmra.mxu1 %vm361_vm0, %v3773_v9 }
0x1568   : > { %v3831_v54 = vpop.f32.mrf.mxu1 }
0x1569   : > { %v3832_v57 = vadd.f32 %v3831_v54, %v3781_v55 }
0x156a   : > { %v4379_v16 = vpop.f32.mrf.mxu1 }
0x156b   : > { %3837 = vst [vmem:[%s349_s14] sm:$0xff] %v3832_v57 }
0x156c   : > { %v3834_v39 = vpop.f32.mrf.mxu1 }
0x156d   : > { %4636 = shalt.err (!%p4633_p9)
}
0x156e   : > { %s4637_s18 = scalar_lea.hbm %s5474_s20, 128  ;;  %s4641_s16 = scalar_lea.hbm %s5525_s8, 256 }
0x156f   : > { %p4638_p13 = scmp.ne.s32.totalorder %s5474_s20, %s4637_s18  ;;  %p4642_p4 = scmp.lt.s32.totalorder %s5474_s20, %s5525_s8 }
0x1570   : > { %p4643_p8 = scmp.lt.s32.totalorder %s4641_s16, %s4637_s18 }
0x1571   : > { %p4639_p5 = pnand %p4638_p13, %p5546_p0 }
0x1572   : > { %p4644_p7 = por %p4643_p8, %p4642_p4 }
0x1573   : > { %p4640_p10 = pneg %p4639_p5 }
0x1575   : > { %p4645_p11 = pnand %p4644_p7, %p4640_p10 }
0x1577   : > { %4648 = shalt.err (!%p4645_p11)
}
0x1578   : > { %4391 = dma.vmem_to_hbm [thread:$0]  (%p5546_p0), %s5476_s24, 128, %s5474_s20, %s3839_s11   ;;  %v4380_v20 = vpop.f32.mrf.mxu1 }
0x1579 PF: > { %s3864_s10 = sand.u32 1, %s4679_s27   ;;  %p5547_p1 = scmp.ne.s32.totalorder %s5533_s12, 0 }
0x157a   : > { %p5548_p2 = scmp.ge.s32.totalorder %s4691_s30, 2  ;;  %s3865_s14 = scalar_lea.sflag [#allocation4], %s3864_s10 }
0x157c   : > { %p4405_p6 = pnand %p5548_p2, %p5547_p1 }
0x157e   : > { %p4406_p12 = pneg %p4405_p6 }
0x1580   : > { %4674 = dma.done.wait (%p4406_p12), %s3865_s14, 128  }
0x1581   : > { %4676 = vsyncadd (%p4406_p12), %s3865_s14, 4294967168  ;;  %s5549_s21 = sld [smem:[#allocation12_spill]]  ;;  %p22_p3 = scmp.ge.s32.totalorder %s4829_s15, 4  }
0x1582   : > { %s5550_s27 = smov %s4683_s28  ;;  %s5551_s28 = smov %s4687_s29 }
0x1583   : > { %s5553_s30 = smov %s4829_s15  ;;  %24 = sbr.rel (!%p22_p3) target bundleno = 9 (0x9), region = 113 }
0x1587   : > { %s5552_s29 = smov %s5549_s21 }
0x1588   :  { %3870 = vsyncpa [#allocation3], 1 }
0x1589   :  { %3872 = vsyncpa [#allocation3 + $0x1], 1 }
0x158a   :  { %3873 = vsyncpa [#allocation6], 1 }
0x158b   :  { %3874 = vsyncpa [#allocation4], 1 }
0x158c   :  { %3876 = vsyncpa [#allocation4 + $0x1], 1 }

</bundles_post_ra>
